<compile_context>
chip_gen: v6e
topology: v6e:2x2x1
jax: 0.10.0
libtpu: 0.0.40
codegen_flags: <defaults>
</compile_context>

<pallas_src>
import functools

import jax
import jax.numpy as jnp
from jax.experimental import pallas as pl
from jax.experimental.pallas import tpu as pltpu


def _round_up(x, m):
    return (x + m - 1) // m * m


def _gru_kernel(x_ref, w_i_ref, w_h_ref, b_i_ref, b_hn_ref, h_out_ref,
                *, T, Bp, G):
    """Whole-sequence GRU in one invocation.

    x_ref    : (T*Bp, E)   bf16, time-major, batch padded to Bp (multiple of 8)
    w_i_ref  : (E, 3G)     bf16 fused input weights, gate g in lanes [g*G, g*G+H)
    w_h_ref  : (G, 3G)     bf16 fused hidden weights (rows >= H are zero)
    b_i_ref  : (1, 3G)     f32: b_ih with b_hr/b_hz pre-folded into r/z blocks
    b_hn_ref : (1, G)      f32: b_hn (must stay inside r * (...))
    h_out    : (Bp, G)     f32 padded final hidden state
    """
    # ---- Batched input projection (off the serial path): one big GEMM. ----
    gi_all = (jnp.dot(x_ref[...], w_i_ref[...],
                      preferred_element_type=jnp.float32)
              + b_i_ref[...])                                   # (T*Bp, 3G) f32

    w_h = w_h_ref[...]                                          # (G, 3G) bf16
    b_hn = b_hn_ref[...]                                        # (1, G) f32

    # ---- Sequential recurrence, fully unrolled (T is small & static). ----
    # TODO(synk): switch to lax.fori_loop with a bounded unroll + T-chunked
    # grid (P3 accumulator pattern) when T*B grows beyond a few MiB of VMEM.
    h = jnp.zeros((Bp, G), jnp.float32)
    for t in range(T):
        gi_t = gi_all[t * Bp:(t + 1) * Bp, :]                   # (Bp, 3G) aligned tile
        # Single bf16 MXU dot per step — the only op on the serial chain.
        gh = jnp.dot(h.astype(jnp.bfloat16), w_h,
                     preferred_element_type=jnp.float32)        # (Bp, 3G) f32

        # Lane-aligned gate math (each gate is a full 128-lane block).
        rz = jax.nn.sigmoid(gi_t[:, :2 * G] + gh[:, :2 * G])    # (Bp, 2G)
        r = rz[:, :G]
        z = rz[:, G:]
        # PyTorch GRU: n = tanh(i_n + b_in + r * (h_n + b_hn)).
        n = jnp.tanh(gi_t[:, 2 * G:] + r * (gh[:, 2 * G:] + b_hn))
        h = (1.0 - z) * n + z * h

    h_out_ref[...] = h


def pack_gru_params(w_ih, w_hh, b_ih, b_hh):
    """One-time (parameter-load-time) packing of PyTorch GRU parameters.

    w_ih : (3H, E), w_hh : (3H, H), b_ih/b_hh : (3H,), gate order r, z, n.
    Returns lane-padded, bf16 weight slabs and f32 biases.
    """
    three_h, _E = w_ih.shape
    H = three_h // 3
    G = _round_up(H, 128)          # one 128-lane block per gate (H <= G)
    E = w_ih.shape[1]

    w_i = jnp.zeros((E, 3 * G), jnp.float32)
    w_h = jnp.zeros((G, 3 * G), jnp.float32)
    b_i = jnp.zeros((1, 3 * G), jnp.float32)
    b_hn = jnp.zeros((1, G), jnp.float32)

    for g in range(3):
        w_i = w_i.at[:, g * G:g * G + H].set(
            w_ih[g * H:(g + 1) * H, :].T.astype(jnp.float32))
        w_h = w_h.at[:H, g * G:g * G + H].set(
            w_hh[g * H:(g + 1) * H, :].T.astype(jnp.float32))

    # Fold b_hr / b_hz into the input-side bias (exactly equivalent); keep
    # b_hn separate — it must stay inside r * (h_n + b_hn).
    b_i = b_i.at[0, 0 * G:0 * G + H].set(
        (b_ih[0:H] + b_hh[0:H]).astype(jnp.float32))
    b_i = b_i.at[0, 1 * G:1 * G + H].set(
        (b_ih[H:2 * H] + b_hh[H:2 * H]).astype(jnp.float32))
    b_i = b_i.at[0, 2 * G:2 * G + H].set(b_ih[2 * H:3 * H].astype(jnp.float32))
    b_hn = b_hn.at[0, :H].set(b_hh[2 * H:3 * H].astype(jnp.float32))

    return {
        "w_i": w_i.astype(jnp.bfloat16),
        "w_h": w_h.astype(jnp.bfloat16),
        "b_i": b_i,
        "b_hn": b_hn,
        "H": H,
    }


@functools.partial(jax.jit, static_argnames=("H",))
def rnn_encoder_forward(x, w_i, w_h, b_i, b_hn, *, H):
    """
    x : (B, T, E) batch-first input.
    w_i/w_h/b_i/b_hn : pre-packed params from pack_gru_params.
    returns hidden[-1] : (B, H) float32
    """
    B, T, E = x.shape
    G = b_hn.shape[1]
    Bp = _round_up(max(B, 8), 8)

    # Time-major + batch padded to a sublane multiple so each per-step tile of
    # the input projection is an aligned (Bp, 3G) slab.
    # TODO(synk): for large T*B*E, express this transpose via a BlockSpec
    # index_map over the original (B, T, E) instead of materializing x_tm.
    x_tm = jnp.transpose(x, (1, 0, 2))                       # (T, B, E)
    x_tm = jnp.pad(x_tm, ((0, 0), (0, Bp - B), (0, 0)))      # (T, Bp, E)
    x_tm = x_tm.reshape(T * Bp, E).astype(jnp.bfloat16)

    # Generation-aware VMEM budget (single-block layout, no pipelining).
    Ep = _round_up(E, 128)
    vmem_bytes = (
        2 * T * Bp * Ep            # x (bf16)
        + 2 * Ep * 3 * G           # w_i (bf16)
        + 2 * G * 3 * G            # w_h (bf16)
        + 4 * 8 * 3 * G            # b_i (f32, sublane-padded)
        + 4 * 8 * G                # b_hn (f32, sublane-padded)
        + 4 * T * Bp * 3 * G       # gi_all (f32)
        + 4 * Bp * 3 * G * 4       # per-step gate temporaries (f32)
        + 4 * Bp * G               # h / output
    )
    try:
        vmem_cap = int(pltpu.get_tpu_info().vmem_capacity_bytes)
    except Exception:
        vmem_cap = 64 * 1024 * 1024   # conservative (v7x per-TC physical VMEM)
    assert vmem_bytes < vmem_cap // 2, (
        "sequence too large for single-block GRU kernel; tile over T "
        f"(need ~{vmem_bytes} B, cap {vmem_cap} B)")
    vmem_limit = int(min(max(2 * vmem_bytes, 16 * 1024 * 1024), vmem_cap // 2))

    vmem_spec = pl.BlockSpec(memory_space=pltpu.MemorySpace.VMEM)

    # TODO(synk): for larger batches on v7x (2 TensorCores), add a grid over
    # the (padded) batch axis with dimension_semantics=("parallel",).
    out_pad = pl.pallas_call(
        functools.partial(_gru_kernel, T=T, Bp=Bp, G=G),
        out_shape=jax.ShapeDtypeStruct((Bp, G), jnp.float32),
        in_specs=[vmem_spec] * 5,
        out_specs=vmem_spec,
        compiler_params=pltpu.CompilerParams(vmem_limit_bytes=vmem_limit),
    )(x_tm, w_i, w_h, b_i, b_hn)

    return out_pad[:B, :H]


def _gru_reference(x, w_ih, w_hh, b_ih, b_hh):
    """Pure-JAX reference matching torch.nn.GRU semantics, using the same
    bf16 matmul operands / f32 accumulation as the kernel (for validation)."""
    B, T, _E = x.shape
    H = w_hh.shape[1]
    w_ih_t = w_ih.T.astype(jnp.bfloat16)
    w_hh_t = w_hh.T.astype(jnp.bfloat16)
    b_ih = b_ih.astype(jnp.float32)
    b_hh = b_hh.astype(jnp.float32)
    h = jnp.zeros((B, H), jnp.float32)
    for t in range(T):
        x_t = x[:, t, :].astype(jnp.bfloat16)
        gi = jnp.dot(x_t, w_ih_t, preferred_element_type=jnp.float32) + b_ih
        gh = jnp.dot(h.astype(jnp.bfloat16), w_hh_t,
                     preferred_element_type=jnp.float32) + b_hh
        i_r, i_z, i_n = gi[:, :H], gi[:, H:2 * H], gi[:, 2 * H:]
        h_r, h_z, h_n = gh[:, :H], gh[:, H:2 * H], gh[:, 2 * H:]
        r = jax.nn.sigmoid(i_r + h_r)
        z = jax.nn.sigmoid(i_z + h_z)
        n = jnp.tanh(i_n + r * h_n)
        h = (1.0 - z) * n + z * h
    return h


if __name__ == "__main__":
    # Small shapes implied by the forward: batch=2, seq=8, embedding_dim=32, hidden_dim=32.
    B, T, E, H = 2, 8, 32, 32

    key = jax.random.PRNGKey(0)
    kx, k1, k2, k3, k4 = jax.random.split(key, 5)

    # Deterministic parameter init (PyTorch-style uniform(-1/sqrt(H), 1/sqrt(H))).
    bound = 1.0 / (H ** 0.5)
    x = jax.random.normal(kx, (B, T, E), jnp.float32)
    w_ih = jax.random.uniform(k1, (3 * H, E), jnp.float32, -bound, bound)
    w_hh = jax.random.uniform(k2, (3 * H, H), jnp.float32, -bound, bound)
    b_ih = jax.random.uniform(k3, (3 * H,), jnp.float32, -bound, bound)
    b_hh = jax.random.uniform(k4, (3 * H,), jnp.float32, -bound, bound)

    # TODO(synk): `lengths`-based pack_padded_sequence path not implemented; only the
    # lengths=None branch (final hidden state of the full sequence) is covered.

    packed = pack_gru_params(w_ih, w_hh, b_ih, b_hh)
    out = rnn_encoder_forward(x, packed["w_i"], packed["w_h"],
                              packed["b_i"], packed["b_hn"], H=packed["H"])
    out = jax.block_until_ready(out)

    ref = _gru_reference(x, w_ih, w_hh, b_ih, b_hh)
    assert out.shape == (B, H)
    assert jnp.allclose(out, ref, atol=1e-2, rtol=1e-2), (
        f"max abs diff {jnp.max(jnp.abs(out - ref))}")

    print("KERNEL_OK")
</pallas_src>

<mosaic_0001>
module attributes {stable_mosaic.version = 11 : i64} {
  func.func @_gru_kernel(%arg0: memref<64x32xbf16, #tpu.memory_space<vmem>>, %arg1: memref<32x384xbf16, #tpu.memory_space<vmem>>, %arg2: memref<128x384xbf16, #tpu.memory_space<vmem>>, %arg3: memref<1x384xf32, #tpu.memory_space<vmem>>, %arg4: memref<1x128xf32, #tpu.memory_space<vmem>>, %arg5: memref<8x128xf32, #tpu.memory_space<vmem>>) attributes {dimension_semantics = [], scalar_prefetch = 0 : i64, scratch_operands = 0 : i64, tpu.core_type = #tpu.core_type<tc>} {
    %c0 = arith.constant 0 : index
    %c0_0 = arith.constant 0 : index
    %0 = vector.load %arg0[%c0, %c0_0] : memref<64x32xbf16, #tpu.memory_space<vmem>>, vector<64x32xbf16>
    %c0_1 = arith.constant 0 : index
    %c0_2 = arith.constant 0 : index
    %1 = vector.load %arg1[%c0_1, %c0_2] : memref<32x384xbf16, #tpu.memory_space<vmem>>, vector<32x384xbf16>
    %cst = arith.constant dense<0.000000e+00> : vector<64x384xf32>
    %2 = tpu.matmul %0, %1, %cst {dimension_numbers = #tpu.dot_dimension_numbers<[1], [0], [0], [1], [0, 0, 1, 1], [], []>} : vector<64x32xbf16>, vector<32x384xbf16>, vector<64x384xf32> -> vector<64x384xf32>
    %c0_3 = arith.constant 0 : index
    %c0_4 = arith.constant 0 : index
    %3 = vector.load %arg3[%c0_3, %c0_4] : memref<1x384xf32, #tpu.memory_space<vmem>>, vector<1x384xf32>
    %4 = vector.broadcast %3 : vector<1x384xf32> to vector<64x384xf32>
    %5 = arith.addf %2, %4 : vector<64x384xf32>
    %c0_5 = arith.constant 0 : index
    %c0_6 = arith.constant 0 : index
    %6 = vector.load %arg2[%c0_5, %c0_6] : memref<128x384xbf16, #tpu.memory_space<vmem>>, vector<128x384xbf16>
    %c0_7 = arith.constant 0 : index
    %c0_8 = arith.constant 0 : index
    %7 = vector.load %arg4[%c0_7, %c0_8] : memref<1x128xf32, #tpu.memory_space<vmem>>, vector<1x128xf32>
    %cst_9 = arith.constant 0.000000e+00 : f32
    %8 = vector.broadcast %cst_9 : f32 to vector<8x128xf32>
    %9 = vector.extract_strided_slice %5 {offsets = [0, 0], sizes = [8, 384], strides = [1, 1]} : vector<64x384xf32> to vector<8x384xf32>
    %10 = arith.truncf %8 : vector<8x128xf32> to vector<8x128xbf16>
    %cst_10 = arith.constant dense<0.000000e+00> : vector<8x384xf32>
    %11 = tpu.matmul %10, %6, %cst_10 {dimension_numbers = #tpu.dot_dimension_numbers<[1], [0], [0], [1], [0, 0, 1, 1], [], []>} : vector<8x128xbf16>, vector<128x384xbf16>, vector<8x384xf32> -> vector<8x384xf32>
    %12 = vector.extract_strided_slice %9 {offsets = [0, 0], sizes = [8, 256], strides = [1, 1]} : vector<8x384xf32> to vector<8x256xf32>
    %13 = vector.extract_strided_slice %11 {offsets = [0, 0], sizes = [8, 256], strides = [1, 1]} : vector<8x384xf32> to vector<8x256xf32>
    %14 = arith.addf %12, %13 : vector<8x256xf32>
    %15 = arith.negf %14 : vector<8x256xf32>
    %16 = math.exp %15 : vector<8x256xf32>
    %cst_11 = arith.constant 1.000000e+00 : f32
    %17 = vector.broadcast %cst_11 : f32 to vector<8x256xf32>
    %18 = arith.addf %17, %16 : vector<8x256xf32>
    %19 = arith.divf %17, %18 : vector<8x256xf32>
    %20 = vector.extract_strided_slice %19 {offsets = [0, 0], sizes = [8, 128], strides = [1, 1]} : vector<8x256xf32> to vector<8x128xf32>
    %21 = vector.extract_strided_slice %19 {offsets = [0, 128], sizes = [8, 128], strides = [1, 1]} : vector<8x256xf32> to vector<8x128xf32>
    %22 = vector.extract_strided_slice %9 {offsets = [0, 256], sizes = [8, 128], strides = [1, 1]} : vector<8x384xf32> to vector<8x128xf32>
    %23 = vector.extract_strided_slice %11 {offsets = [0, 256], sizes = [8, 128], strides = [1, 1]} : vector<8x384xf32> to vector<8x128xf32>
    %24 = vector.broadcast %7 : vector<1x128xf32> to vector<8x128xf32>
    %25 = arith.addf %23, %24 : vector<8x128xf32>
    %26 = arith.mulf %20, %25 : vector<8x128xf32>
    %27 = arith.addf %22, %26 : vector<8x128xf32>
    %28 = math.tanh %27 : vector<8x128xf32>
    %cst_12 = arith.constant 1.000000e+00 : f32
    %29 = vector.broadcast %cst_12 : f32 to vector<8x128xf32>
    %30 = arith.subf %29, %21 : vector<8x128xf32>
    %31 = arith.mulf %30, %28 : vector<8x128xf32>
    %32 = arith.mulf %21, %8 : vector<8x128xf32>
    %33 = arith.addf %31, %32 : vector<8x128xf32>
    %34 = vector.extract_strided_slice %5 {offsets = [8, 0], sizes = [8, 384], strides = [1, 1]} : vector<64x384xf32> to vector<8x384xf32>
    %35 = arith.truncf %33 : vector<8x128xf32> to vector<8x128xbf16>
    %cst_13 = arith.constant dense<0.000000e+00> : vector<8x384xf32>
    %36 = tpu.matmul %35, %6, %cst_13 {dimension_numbers = #tpu.dot_dimension_numbers<[1], [0], [0], [1], [0, 0, 1, 1], [], []>} : vector<8x128xbf16>, vector<128x384xbf16>, vector<8x384xf32> -> vector<8x384xf32>
    %37 = vector.extract_strided_slice %34 {offsets = [0, 0], sizes = [8, 256], strides = [1, 1]} : vector<8x384xf32> to vector<8x256xf32>
    %38 = vector.extract_strided_slice %36 {offsets = [0, 0], sizes = [8, 256], strides = [1, 1]} : vector<8x384xf32> to vector<8x256xf32>
    %39 = arith.addf %37, %38 : vector<8x256xf32>
    %40 = arith.negf %39 : vector<8x256xf32>
    %41 = math.exp %40 : vector<8x256xf32>
    %cst_14 = arith.constant 1.000000e+00 : f32
    %42 = vector.broadcast %cst_14 : f32 to vector<8x256xf32>
    %43 = arith.addf %42, %41 : vector<8x256xf32>
    %44 = arith.divf %42, %43 : vector<8x256xf32>
    %45 = vector.extract_strided_slice %44 {offsets = [0, 0], sizes = [8, 128], strides = [1, 1]} : vector<8x256xf32> to vector<8x128xf32>
    %46 = vector.extract_strided_slice %44 {offsets = [0, 128], sizes = [8, 128], strides = [1, 1]} : vector<8x256xf32> to vector<8x128xf32>
    %47 = vector.extract_strided_slice %34 {offsets = [0, 256], sizes = [8, 128], strides = [1, 1]} : vector<8x384xf32> to vector<8x128xf32>
    %48 = vector.extract_strided_slice %36 {offsets = [0, 256], sizes = [8, 128], strides = [1, 1]} : vector<8x384xf32> to vector<8x128xf32>
    %49 = vector.broadcast %7 : vector<1x128xf32> to vector<8x128xf32>
    %50 = arith.addf %48, %49 : vector<8x128xf32>
    %51 = arith.mulf %45, %50 : vector<8x128xf32>
    %52 = arith.addf %47, %51 : vector<8x128xf32>
    %53 = math.tanh %52 : vector<8x128xf32>
    %cst_15 = arith.constant 1.000000e+00 : f32
    %54 = vector.broadcast %cst_15 : f32 to vector<8x128xf32>
    %55 = arith.subf %54, %46 : vector<8x128xf32>
    %56 = arith.mulf %55, %53 : vector<8x128xf32>
    %57 = arith.mulf %46, %33 : vector<8x128xf32>
    %58 = arith.addf %56, %57 : vector<8x128xf32>
    %59 = vector.extract_strided_slice %5 {offsets = [16, 0], sizes = [8, 384], strides = [1, 1]} : vector<64x384xf32> to vector<8x384xf32>
    %60 = arith.truncf %58 : vector<8x128xf32> to vector<8x128xbf16>
    %cst_16 = arith.constant dense<0.000000e+00> : vector<8x384xf32>
    %61 = tpu.matmul %60, %6, %cst_16 {dimension_numbers = #tpu.dot_dimension_numbers<[1], [0], [0], [1], [0, 0, 1, 1], [], []>} : vector<8x128xbf16>, vector<128x384xbf16>, vector<8x384xf32> -> vector<8x384xf32>
    %62 = vector.extract_strided_slice %59 {offsets = [0, 0], sizes = [8, 256], strides = [1, 1]} : vector<8x384xf32> to vector<8x256xf32>
    %63 = vector.extract_strided_slice %61 {offsets = [0, 0], sizes = [8, 256], strides = [1, 1]} : vector<8x384xf32> to vector<8x256xf32>
    %64 = arith.addf %62, %63 : vector<8x256xf32>
    %65 = arith.negf %64 : vector<8x256xf32>
    %66 = math.exp %65 : vector<8x256xf32>
    %cst_17 = arith.constant 1.000000e+00 : f32
    %67 = vector.broadcast %cst_17 : f32 to vector<8x256xf32>
    %68 = arith.addf %67, %66 : vector<8x256xf32>
    %69 = arith.divf %67, %68 : vector<8x256xf32>
    %70 = vector.extract_strided_slice %69 {offsets = [0, 0], sizes = [8, 128], strides = [1, 1]} : vector<8x256xf32> to vector<8x128xf32>
    %71 = vector.extract_strided_slice %69 {offsets = [0, 128], sizes = [8, 128], strides = [1, 1]} : vector<8x256xf32> to vector<8x128xf32>
    %72 = vector.extract_strided_slice %59 {offsets = [0, 256], sizes = [8, 128], strides = [1, 1]} : vector<8x384xf32> to vector<8x128xf32>
    %73 = vector.extract_strided_slice %61 {offsets = [0, 256], sizes = [8, 128], strides = [1, 1]} : vector<8x384xf32> to vector<8x128xf32>
    %74 = vector.broadcast %7 : vector<1x128xf32> to vector<8x128xf32>
    %75 = arith.addf %73, %74 : vector<8x128xf32>
    %76 = arith.mulf %70, %75 : vector<8x128xf32>
    %77 = arith.addf %72, %76 : vector<8x128xf32>
    %78 = math.tanh %77 : vector<8x128xf32>
    %cst_18 = arith.constant 1.000000e+00 : f32
    %79 = vector.broadcast %cst_18 : f32 to vector<8x128xf32>
    %80 = arith.subf %79, %71 : vector<8x128xf32>
    %81 = arith.mulf %80, %78 : vector<8x128xf32>
    %82 = arith.mulf %71, %58 : vector<8x128xf32>
    %83 = arith.addf %81, %82 : vector<8x128xf32>
    %84 = vector.extract_strided_slice %5 {offsets = [24, 0], sizes = [8, 384], strides = [1, 1]} : vector<64x384xf32> to vector<8x384xf32>
    %85 = arith.truncf %83 : vector<8x128xf32> to vector<8x128xbf16>
    %cst_19 = arith.constant dense<0.000000e+00> : vector<8x384xf32>
    %86 = tpu.matmul %85, %6, %cst_19 {dimension_numbers = #tpu.dot_dimension_numbers<[1], [0], [0], [1], [0, 0, 1, 1], [], []>} : vector<8x128xbf16>, vector<128x384xbf16>, vector<8x384xf32> -> vector<8x384xf32>
    %87 = vector.extract_strided_slice %84 {offsets = [0, 0], sizes = [8, 256], strides = [1, 1]} : vector<8x384xf32> to vector<8x256xf32>
    %88 = vector.extract_strided_slice %86 {offsets = [0, 0], sizes = [8, 256], strides = [1, 1]} : vector<8x384xf32> to vector<8x256xf32>
    %89 = arith.addf %87, %88 : vector<8x256xf32>
    %90 = arith.negf %89 : vector<8x256xf32>
    %91 = math.exp %90 : vector<8x256xf32>
    %cst_20 = arith.constant 1.000000e+00 : f32
    %92 = vector.broadcast %cst_20 : f32 to vector<8x256xf32>
    %93 = arith.addf %92, %91 : vector<8x256xf32>
    %94 = arith.divf %92, %93 : vector<8x256xf32>
    %95 = vector.extract_strided_slice %94 {offsets = [0, 0], sizes = [8, 128], strides = [1, 1]} : vector<8x256xf32> to vector<8x128xf32>
    %96 = vector.extract_strided_slice %94 {offsets = [0, 128], sizes = [8, 128], strides = [1, 1]} : vector<8x256xf32> to vector<8x128xf32>
    %97 = vector.extract_strided_slice %84 {offsets = [0, 256], sizes = [8, 128], strides = [1, 1]} : vector<8x384xf32> to vector<8x128xf32>
    %98 = vector.extract_strided_slice %86 {offsets = [0, 256], sizes = [8, 128], strides = [1, 1]} : vector<8x384xf32> to vector<8x128xf32>
    %99 = vector.broadcast %7 : vector<1x128xf32> to vector<8x128xf32>
    %100 = arith.addf %98, %99 : vector<8x128xf32>
    %101 = arith.mulf %95, %100 : vector<8x128xf32>
    %102 = arith.addf %97, %101 : vector<8x128xf32>
    %103 = math.tanh %102 : vector<8x128xf32>
    %cst_21 = arith.constant 1.000000e+00 : f32
    %104 = vector.broadcast %cst_21 : f32 to vector<8x128xf32>
    %105 = arith.subf %104, %96 : vector<8x128xf32>
    %106 = arith.mulf %105, %103 : vector<8x128xf32>
    %107 = arith.mulf %96, %83 : vector<8x128xf32>
    %108 = arith.addf %106, %107 : vector<8x128xf32>
    %109 = vector.extract_strided_slice %5 {offsets = [32, 0], sizes = [8, 384], strides = [1, 1]} : vector<64x384xf32> to vector<8x384xf32>
    %110 = arith.truncf %108 : vector<8x128xf32> to vector<8x128xbf16>
    %cst_22 = arith.constant dense<0.000000e+00> : vector<8x384xf32>
    %111 = tpu.matmul %110, %6, %cst_22 {dimension_numbers = #tpu.dot_dimension_numbers<[1], [0], [0], [1], [0, 0, 1, 1], [], []>} : vector<8x128xbf16>, vector<128x384xbf16>, vector<8x384xf32> -> vector<8x384xf32>
    %112 = vector.extract_strided_slice %109 {offsets = [0, 0], sizes = [8, 256], strides = [1, 1]} : vector<8x384xf32> to vector<8x256xf32>
    %113 = vector.extract_strided_slice %111 {offsets = [0, 0], sizes = [8, 256], strides = [1, 1]} : vector<8x384xf32> to vector<8x256xf32>
    %114 = arith.addf %112, %113 : vector<8x256xf32>
    %115 = arith.negf %114 : vector<8x256xf32>
    %116 = math.exp %115 : vector<8x256xf32>
    %cst_23 = arith.constant 1.000000e+00 : f32
    %117 = vector.broadcast %cst_23 : f32 to vector<8x256xf32>
    %118 = arith.addf %117, %116 : vector<8x256xf32>
    %119 = arith.divf %117, %118 : vector<8x256xf32>
    %120 = vector.extract_strided_slice %119 {offsets = [0, 0], sizes = [8, 128], strides = [1, 1]} : vector<8x256xf32> to vector<8x128xf32>
    %121 = vector.extract_strided_slice %119 {offsets = [0, 128], sizes = [8, 128], strides = [1, 1]} : vector<8x256xf32> to vector<8x128xf32>
    %122 = vector.extract_strided_slice %109 {offsets = [0, 256], sizes = [8, 128], strides = [1, 1]} : vector<8x384xf32> to vector<8x128xf32>
    %123 = vector.extract_strided_slice %111 {offsets = [0, 256], sizes = [8, 128], strides = [1, 1]} : vector<8x384xf32> to vector<8x128xf32>
    %124 = vector.broadcast %7 : vector<1x128xf32> to vector<8x128xf32>
    %125 = arith.addf %123, %124 : vector<8x128xf32>
    %126 = arith.mulf %120, %125 : vector<8x128xf32>
    %127 = arith.addf %122, %126 : vector<8x128xf32>
    %128 = math.tanh %127 : vector<8x128xf32>
    %cst_24 = arith.constant 1.000000e+00 : f32
    %129 = vector.broadcast %cst_24 : f32 to vector<8x128xf32>
    %130 = arith.subf %129, %121 : vector<8x128xf32>
    %131 = arith.mulf %130, %128 : vector<8x128xf32>
    %132 = arith.mulf %121, %108 : vector<8x128xf32>
    %133 = arith.addf %131, %132 : vector<8x128xf32>
    %134 = vector.extract_strided_slice %5 {offsets = [40, 0], sizes = [8, 384], strides = [1, 1]} : vector<64x384xf32> to vector<8x384xf32>
    %135 = arith.truncf %133 : vector<8x128xf32> to vector<8x128xbf16>
    %cst_25 = arith.constant dense<0.000000e+00> : vector<8x384xf32>
    %136 = tpu.matmul %135, %6, %cst_25 {dimension_numbers = #tpu.dot_dimension_numbers<[1], [0], [0], [1], [0, 0, 1, 1], [], []>} : vector<8x128xbf16>, vector<128x384xbf16>, vector<8x384xf32> -> vector<8x384xf32>
    %137 = vector.extract_strided_slice %134 {offsets = [0, 0], sizes = [8, 256], strides = [1, 1]} : vector<8x384xf32> to vector<8x256xf32>
    %138 = vector.extract_strided_slice %136 {offsets = [0, 0], sizes = [8, 256], strides = [1, 1]} : vector<8x384xf32> to vector<8x256xf32>
    %139 = arith.addf %137, %138 : vector<8x256xf32>
    %140 = arith.negf %139 : vector<8x256xf32>
    %141 = math.exp %140 : vector<8x256xf32>
    %cst_26 = arith.constant 1.000000e+00 : f32
    %142 = vector.broadcast %cst_26 : f32 to vector<8x256xf32>
    %143 = arith.addf %142, %141 : vector<8x256xf32>
    %144 = arith.divf %142, %143 : vector<8x256xf32>
    %145 = vector.extract_strided_slice %144 {offsets = [0, 0], sizes = [8, 128], strides = [1, 1]} : vector<8x256xf32> to vector<8x128xf32>
    %146 = vector.extract_strided_slice %144 {offsets = [0, 128], sizes = [8, 128], strides = [1, 1]} : vector<8x256xf32> to vector<8x128xf32>
    %147 = vector.extract_strided_slice %134 {offsets = [0, 256], sizes = [8, 128], strides = [1, 1]} : vector<8x384xf32> to vector<8x128xf32>
    %148 = vector.extract_strided_slice %136 {offsets = [0, 256], sizes = [8, 128], strides = [1, 1]} : vector<8x384xf32> to vector<8x128xf32>
    %149 = vector.broadcast %7 : vector<1x128xf32> to vector<8x128xf32>
    %150 = arith.addf %148, %149 : vector<8x128xf32>
    %151 = arith.mulf %145, %150 : vector<8x128xf32>
    %152 = arith.addf %147, %151 : vector<8x128xf32>
    %153 = math.tanh %152 : vector<8x128xf32>
    %cst_27 = arith.constant 1.000000e+00 : f32
    %154 = vector.broadcast %cst_27 : f32 to vector<8x128xf32>
    %155 = arith.subf %154, %146 : vector<8x128xf32>
    %156 = arith.mulf %155, %153 : vector<8x128xf32>
    %157 = arith.mulf %146, %133 : vector<8x128xf32>
    %158 = arith.addf %156, %157 : vector<8x128xf32>
    %159 = vector.extract_strided_slice %5 {offsets = [48, 0], sizes = [8, 384], strides = [1, 1]} : vector<64x384xf32> to vector<8x384xf32>
    %160 = arith.truncf %158 : vector<8x128xf32> to vector<8x128xbf16>
    %cst_28 = arith.constant dense<0.000000e+00> : vector<8x384xf32>
    %161 = tpu.matmul %160, %6, %cst_28 {dimension_numbers = #tpu.dot_dimension_numbers<[1], [0], [0], [1], [0, 0, 1, 1], [], []>} : vector<8x128xbf16>, vector<128x384xbf16>, vector<8x384xf32> -> vector<8x384xf32>
    %162 = vector.extract_strided_slice %159 {offsets = [0, 0], sizes = [8, 256], strides = [1, 1]} : vector<8x384xf32> to vector<8x256xf32>
    %163 = vector.extract_strided_slice %161 {offsets = [0, 0], sizes = [8, 256], strides = [1, 1]} : vector<8x384xf32> to vector<8x256xf32>
    %164 = arith.addf %162, %163 : vector<8x256xf32>
    %165 = arith.negf %164 : vector<8x256xf32>
    %166 = math.exp %165 : vector<8x256xf32>
    %cst_29 = arith.constant 1.000000e+00 : f32
    %167 = vector.broadcast %cst_29 : f32 to vector<8x256xf32>
    %168 = arith.addf %167, %166 : vector<8x256xf32>
    %169 = arith.divf %167, %168 : vector<8x256xf32>
    %170 = vector.extract_strided_slice %169 {offsets = [0, 0], sizes = [8, 128], strides = [1, 1]} : vector<8x256xf32> to vector<8x128xf32>
    %171 = vector.extract_strided_slice %169 {offsets = [0, 128], sizes = [8, 128], strides = [1, 1]} : vector<8x256xf32> to vector<8x128xf32>
    %172 = vector.extract_strided_slice %159 {offsets = [0, 256], sizes = [8, 128], strides = [1, 1]} : vector<8x384xf32> to vector<8x128xf32>
    %173 = vector.extract_strided_slice %161 {offsets = [0, 256], sizes = [8, 128], strides = [1, 1]} : vector<8x384xf32> to vector<8x128xf32>
    %174 = vector.broadcast %7 : vector<1x128xf32> to vector<8x128xf32>
    %175 = arith.addf %173, %174 : vector<8x128xf32>
    %176 = arith.mulf %170, %175 : vector<8x128xf32>
    %177 = arith.addf %172, %176 : vector<8x128xf32>
    %178 = math.tanh %177 : vector<8x128xf32>
    %cst_30 = arith.constant 1.000000e+00 : f32
    %179 = vector.broadcast %cst_30 : f32 to vector<8x128xf32>
    %180 = arith.subf %179, %171 : vector<8x128xf32>
    %181 = arith.mulf %180, %178 : vector<8x128xf32>
    %182 = arith.mulf %171, %158 : vector<8x128xf32>
    %183 = arith.addf %181, %182 : vector<8x128xf32>
    %184 = vector.extract_strided_slice %5 {offsets = [56, 0], sizes = [8, 384], strides = [1, 1]} : vector<64x384xf32> to vector<8x384xf32>
    %185 = arith.truncf %183 : vector<8x128xf32> to vector<8x128xbf16>
    %cst_31 = arith.constant dense<0.000000e+00> : vector<8x384xf32>
    %186 = tpu.matmul %185, %6, %cst_31 {dimension_numbers = #tpu.dot_dimension_numbers<[1], [0], [0], [1], [0, 0, 1, 1], [], []>} : vector<8x128xbf16>, vector<128x384xbf16>, vector<8x384xf32> -> vector<8x384xf32>
    %187 = vector.extract_strided_slice %184 {offsets = [0, 0], sizes = [8, 256], strides = [1, 1]} : vector<8x384xf32> to vector<8x256xf32>
    %188 = vector.extract_strided_slice %186 {offsets = [0, 0], sizes = [8, 256], strides = [1, 1]} : vector<8x384xf32> to vector<8x256xf32>
    %189 = arith.addf %187, %188 : vector<8x256xf32>
    %190 = arith.negf %189 : vector<8x256xf32>
    %191 = math.exp %190 : vector<8x256xf32>
    %cst_32 = arith.constant 1.000000e+00 : f32
    %192 = vector.broadcast %cst_32 : f32 to vector<8x256xf32>
    %193 = arith.addf %192, %191 : vector<8x256xf32>
    %194 = arith.divf %192, %193 : vector<8x256xf32>
    %195 = vector.extract_strided_slice %194 {offsets = [0, 0], sizes = [8, 128], strides = [1, 1]} : vector<8x256xf32> to vector<8x128xf32>
    %196 = vector.extract_strided_slice %194 {offsets = [0, 128], sizes = [8, 128], strides = [1, 1]} : vector<8x256xf32> to vector<8x128xf32>
    %197 = vector.extract_strided_slice %184 {offsets = [0, 256], sizes = [8, 128], strides = [1, 1]} : vector<8x384xf32> to vector<8x128xf32>
    %198 = vector.extract_strided_slice %186 {offsets = [0, 256], sizes = [8, 128], strides = [1, 1]} : vector<8x384xf32> to vector<8x128xf32>
    %199 = vector.broadcast %7 : vector<1x128xf32> to vector<8x128xf32>
    %200 = arith.addf %198, %199 : vector<8x128xf32>
    %201 = arith.mulf %195, %200 : vector<8x128xf32>
    %202 = arith.addf %197, %201 : vector<8x128xf32>
    %203 = math.tanh %202 : vector<8x128xf32>
    %cst_33 = arith.constant 1.000000e+00 : f32
    %204 = vector.broadcast %cst_33 : f32 to vector<8x128xf32>
    %205 = arith.subf %204, %196 : vector<8x128xf32>
    %206 = arith.mulf %205, %203 : vector<8x128xf32>
    %207 = arith.mulf %196, %183 : vector<8x128xf32>
    %208 = arith.addf %206, %207 : vector<8x128xf32>
    %c0_34 = arith.constant 0 : index
    %c0_35 = arith.constant 0 : index
    %209 = vector.load %arg5[%c0_34, %c0_35] : memref<8x128xf32, #tpu.memory_space<vmem>>, vector<8x128xf32>
    tpu.vector_store %arg5[%c0_34, %c0_35], %208 {strides = array<i32>} : memref<8x128xf32, #tpu.memory_space<vmem>>, vector<8x128xf32>,
    return
  }
}

</mosaic_0001>

<bundles_post_ra>
// kernel: rnn_encoder_forward.1
= control target key start
LH: loop header
LB: loop body
LE: loop exit
PB: predicated region body
PF: predicated region fallthrough
CT: control target
= control target key end

     0   :  { %10 = vsyncpa [#allocation3], 0  ;;  %s1755_s18 = smov [#allocation2]   ;;  %s2265_s0 = inlined_call_operand.vmem [shape: bf16[64,32], index: 0, kind: input, shape index: {}]   ;;  %s2266_s1 = inlined_call_operand.vmem [shape: bf16[32,384], index: 1, kind: input, shape index: {}]   ;;  %s2267_s2 = inlined_call_operand.hbm [shape: bf16[128,384], index: 2, kind: input, shape index: {}]   ;;  %s2268_s3 = inlined_call_operand.vmem [shape: f32[1,384], index: 3, kind: input, shape index: {}]   ;;  %s2269_s4 = inlined_call_operand.vmem [shape: f32[1,128], index: 4, kind: input, shape index: {}]   ;;  %s2270_s5 = inlined_call_operand.vmem [shape: f32[8,128], index: 5, kind: output, shape index: {}]  }
   0x1   :  { %s20_s19 = sshll.u32 %s1755_s18, 4  ;;  %s21_s19 = int_to_ptr.vmem [resolvable:$true] %s20_s19 }
   0x2   :  { %s1741_s20 = scalar_lea.vmem %s21_s19, 3072  ;;  %p1746_p1 = scmp.lt.s32.totalorder %s21_s19, %s21_s19 }
   0x3   :  { %p1742_p0 = scmp.ne.s32.totalorder %s21_s19, %s1741_s20  ;;  %p1747_p2 = scmp.lt.s32.totalorder %s1741_s20, %s1741_s20 }
   0x5   :  { %p1748_p3 = por %p1747_p2, %p1746_p1 }
   0x7   :  { %p1749_p4 = pnand %p1748_p3, %p1742_p0 }
   0x9   :  { %1752 = shalt.err (!%p1749_p4)
}
   0xa   :  { %s1756_s21 = smov 192   ;;  %s1757_s22 = smov 12  }
   0xb   :  { %26 = dma.hbm_to_vmem [thread:$0]  %s2267_s2, 3072, %s21_s19, [#allocation3], %s1756_s21, %s1756_s21, %s1757_s22  }
   0xc   :  { %1753 = dma.done.wait [#allocation3], 3072  }
   0xd   :  { %1754 = vsyncadd [#allocation3], 4294964224  ;;  %v2271_v0 = vmov 0   ;;  %v1590_v1 = vld [vmem:[%s2266_s1 + $0x1c] ss:$12 sps:$4 sm:$0xff]   ;;  %v1596_v5 = vld [vmem:[%s2265_s0] sm:$0xff]   ;;  %v53_v36 = vlaneseq }
   0xe   :  { %165 = vmatprep.mubr.bf16.mxu0 %v2271_v0  ;;  %v1592_v2 = vld [vmem:[%s2266_s1 + $0x18] ss:$12 sps:$4 sm:$0xff]   ;;  %145 = vmatprep.subr.bf16.mxu0 %v1590_v1  ;;  %v1595_v4 = vld [vmem:[%s2266_s1] ss:$12 sps:$4 sm:$0xff]   ;;  %vm120_vm0 = vcmask 261120   ;;  %v1610_v19 = vld [vmem:[%s2265_s0 + $0x10] sm:$0xff]  }
   0xf   :  { %v1593_v3 = vld [vmem:[%s2266_s1 + $0x4] ss:$12 sps:$4 sm:$0xff]   ;;  %146 = vmatpush1.bf16.msra.mxu0 %v1592_v2  ;;  %v1810_v6 = vld [vmem:[#allocation2 + $0xac] ss:$12 sps:$4 sm:$0xff]   ;;  %1416 = vmatprep.mubr.msk.bf16.mxu1 %vm120_vm0, %v1596_v5  ;;  %v1813_v7 = vld [vmem:[#allocation2 + $0xa8] ss:$12 sps:$4 sm:$0xff]  }
  0x10   :  { %147 = vmatprep.subr.bf16.mxu0 %v1593_v3  ;;  %v1816_v8 = vld [vmem:[#allocation2 + $0x94] ss:$12 sps:$4 sm:$0xff]   ;;  %v1820_v9 = vld [vmem:[#allocation2 + $0x90] ss:$12 sps:$4 sm:$0xff]   ;;  %v1603_v12 = vld [vmem:[%s2265_s0 + $0x8] sm:$0xff]   ;;  %v2273_v20 = vmov 0.0  }
  0x11   :  { %v1824_v10 = vld [vmem:[#allocation2 + $0x7c] ss:$12 sps:$4 sm:$0xff]   ;;  %v1614_v11 = vld [vmem:[%s2266_s1 + $0x20] ss:$12 sps:$4 sm:$0xff]   ;;  %v1832_v13 = vld [vmem:[#allocation2 + $0x78] ss:$12 sps:$4 sm:$0xff]  }
  0x12   :  { %1412 = vmatprep.subr.bf16.mxu1 %v1614_v11  ;;  %v1618_v14 = vld [vmem:[%s2266_s1 + $0x8] ss:$12 sps:$4 sm:$0xff]   ;;  %v1839_v15 = vld [vmem:[#allocation2 + $0x64] ss:$12 sps:$4 sm:$0xff]   ;;  %v1842_v16 = vld [vmem:[#allocation2 + $0x60] ss:$12 sps:$4 sm:$0xff]  }
  0x13   :  { %148 = vmatpush1.bf16.msra.mxu0 %v1595_v4  ;;  %1413 = vmatpush3.bf16.msra.mxu1 %v1614_v11  ;;  %v1846_v17 = vld [vmem:[#allocation2 + $0x4c] ss:$12 sps:$4 sm:$0xff]   ;;  %v1849_v18 = vld [vmem:[#allocation2 + $0xb0] ss:$12 sps:$4 sm:$0xff]   ;;  %v1855_v21 = vld [vmem:[#allocation2 + $0x48] ss:$12 sps:$4 sm:$0xff]  }
  0x14   :  { %432 = vmatprep.subr.bf16.mxu0 %v1810_v6  ;;  %1414 = vmatprep.subr.bf16.mxu1 %v1618_v14  ;;  %v1858_v22 = vld [vmem:[#allocation2 + $0x34] ss:$12 sps:$4 sm:$0xff]   ;;  %v1863_v23 = vld [vmem:[#allocation2 + $0x98] ss:$12 sps:$4 sm:$0xff]   ;;  %v1869_v24 = vld [vmem:[#allocation2 + $0x30] ss:$12 sps:$4 sm:$0xff]  }
  0x15   :  { %v1873_v25 = vld [vmem:[#allocation2 + $0x1c] ss:$12 sps:$4 sm:$0xff]   ;;  %v1876_v26 = vld [vmem:[#allocation2 + $0x80] ss:$12 sps:$4 sm:$0xff]   ;;  %v1883_v28 = vld [vmem:[#allocation2 + $0x18] ss:$12 sps:$4 sm:$0xff]  }
  0x16   :  { %1285 = vmatmul.mubr.msk.bf16.vlgmr.msra.gmra.mxu0 %vm120_vm0, %v1596_v5  ;;  %v1619_v27 = vld [vmem:[%s2265_s0 + $0x18] sm:$0xff]   ;;  %v1887_v29 = vld [vmem:[#allocation2 + $0x4] ss:$12 sps:$4 sm:$0xff]   ;;  %v1890_v30 = vld [vmem:[#allocation2 + $0x68] ss:$12 sps:$4 sm:$0xff]   ;;  %vm1760_vm1 = vmmov 0  }
  0x17   :  { %433 = vmatpush1.bf16.msra.mxu0 %v1813_v7  ;;  %175 = vmatprep.mubr.bf16.mxu0 %v2271_v0  ;;  %v1897_v31 = vld [vmem:[#allocation2] ss:$12 sps:$4 sm:$0xff]   ;;  %v1902_v32 = vld [vmem:[#allocation2 + $0x50] ss:$12 sps:$4 sm:$0xff]   ;;  %v1907_v33 = vld [vmem:[#allocation2 + $0x38] ss:$12 sps:$4 sm:$0xff]  }
  0x18   :  { %434 = vmatprep.subr.bf16.mxu0 %v1816_v8  ;;  %1415 = vmatpush3.bf16.msra.mxu1 %v1618_v14  ;;  %v1915_v34 = vld [vmem:[#allocation2 + $0x20] ss:$12 sps:$4 sm:$0xff]   ;;  %v1921_v35 = vld [vmem:[#allocation2 + $0x8] ss:$12 sps:$4 sm:$0xff]   ;;  %v54_v37 = vshrl.u32 %v53_v36, 7 }
  0x19   :  { %1424 = vmatprep.subr.bf16.mxu1 %v2273_v20  ;;  %v51_v39 = vld [vmem:[%s2268_s3] sm:$0x7] }
  0x1a   :  { %v55_v38 = vsub.s32 0, %v54_v37  ;;  %v59_v41 = vsub.s32 1, %v54_v37  ;;  %v63_v48 = vsub.s32 2, %v54_v37 }
  0x1b   :  { %435 = vmatpush1.bf16.msra.mxu0 %v1820_v9  ;;  %1417 = vmatmul.mubr.msk.bf16.vlgmr.msra.gmra.mxu1 %vm120_vm0, %v1603_v12 }
  0x1c   :  { %436 = vmatprep.subr.bf16.mxu0 %v1824_v10  ;;  %1425 = vmatpush3.bf16.msra.mxu1 %v1849_v18  ;;  %v56_v43 = vrot.slane %v51_v39, %v55_v38  ;;  %v60_v45 = vrot.slane %v51_v39, %v59_v41  ;;  %v64_v53 = vrot.slane %v51_v39, %v63_v48 }
  0x1d   :  { %1426 = vmatprep.subr.bf16.mxu1 %v2273_v20  ;;  %1420 = vmatprep.mubr.msk.bf16.mxu1 %vm120_vm0, %v1610_v19 }
  0x1e   :  { %1286 = vmatmul.mubr.msk.bf16.gmra.mxu0 %vm120_vm0, %v1603_v12 }
  0x1f   :  { %437 = vmatpush1.bf16.msra.mxu0 %v1832_v13  ;;  %185 = vmatprep.mubr.bf16.mxu0 %v2271_v0 }
  0x20   :  { %438 = vmatprep.subr.bf16.mxu0 %v1839_v15  ;;  %1427 = vmatpush3.bf16.msra.mxu1 %v1863_v23 }
  0x21   :  { %1428 = vmatprep.subr.bf16.mxu1 %v2273_v20 }
  0x23   :  { %439 = vmatpush1.bf16.msra.mxu0 %v1842_v16  ;;  %1421 = vmatmul.mubr.msk.bf16.gmra.mxu1 %vm120_vm0, %v1619_v27 }
  0x24   :  { %440 = vmatprep.subr.bf16.mxu0 %v1846_v17  ;;  %1429 = vmatpush3.bf16.msra.mxu1 %v1876_v26 }
  0x25   :  { %1430 = vmatprep.subr.bf16.mxu1 %v2273_v20  ;;  %1440 = vmatprep.mubr.msk.bf16.mxu1 %vm1760_vm1, %v2273_v20 }
  0x26   :  { %1287 = vmatmul.mubr.msk.bf16.gmra.mxu0 %vm120_vm0, %v1610_v19 }
  0x27   :  { %441 = vmatpush1.bf16.msra.mxu0 %v1855_v21  ;;  %195 = vmatprep.mubr.bf16.mxu0 %v2271_v0 }
  0x28   :  { %442 = vmatprep.subr.bf16.mxu0 %v1858_v22  ;;  %1431 = vmatpush3.bf16.msra.mxu1 %v1890_v30 }
  0x29   :  { %1432 = vmatprep.subr.bf16.mxu1 %v2273_v20 }
  0x2b   :  { %443 = vmatpush1.bf16.msra.mxu0 %v1869_v24 }
  0x2c   :  { %444 = vmatprep.subr.bf16.mxu0 %v1873_v25  ;;  %1433 = vmatpush3.bf16.msra.mxu1 %v1902_v32 }
  0x2d   :  { %1434 = vmatprep.subr.bf16.mxu1 %v2273_v20 }
  0x2e   :  { %1288 = vmatmul.mubr.msk.bf16.gmra.mxu0 %vm120_vm0, %v1619_v27 }
  0x2f   :  { %445 = vmatpush1.bf16.msra.mxu0 %v1883_v28  ;;  %464 = vmatprep.mubr.bf16.mxu0 %v2271_v0 }
  0x30   :  { %446 = vmatprep.subr.bf16.mxu0 %v1887_v29  ;;  %1435 = vmatpush3.bf16.msra.mxu1 %v1907_v33 }
  0x31   :  { %1436 = vmatprep.subr.bf16.mxu1 %v2273_v20 }
  0x33   :  { %447 = vmatpush1.bf16.msra.mxu0 %v1897_v31 }
  0x34   :  { %542 = vmatprep.subr.bf16.mxu0 %v1810_v6  ;;  %1437 = vmatpush3.bf16.msra.mxu1 %v1915_v34 }
  0x35   :  { %1438 = vmatprep.subr.bf16.mxu1 %v2273_v20 }
  0x36   :  { %465 = vmatmul.mubr.bf16.vlgmr.msra.gmra.mxu0 %v2271_v0 }
  0x37   :  { %543 = vmatpush1.bf16.msra.mxu0 %v1813_v7  ;;  %574 = vmatprep.mubr.bf16.mxu0 %v2271_v0 }
  0x38   :  { %544 = vmatprep.subr.bf16.mxu0 %v1816_v8  ;;  %1439 = vmatpush3.bf16.msra.mxu1 %v1921_v35 }
  0x39   :  { %1444 = vmatprep.subr.bf16.mxu1 %v2273_v20 }
  0x3b   :  { %545 = vmatpush1.bf16.msra.mxu0 %v1820_v9  ;;  %1441 = vmatmul.mubr.bf16.vlgmr.msra.gmra.mxu1 %v2271_v0 }
  0x3c   :  { %546 = vmatprep.subr.bf16.mxu0 %v1824_v10  ;;  %1445 = vmatpush3.bf16.msra.mxu1 %v1849_v18 }
  0x3d   :  { %1446 = vmatprep.subr.bf16.mxu1 %v2273_v20  ;;  %1460 = vmatprep.mubr.msk.bf16.mxu1 %vm1760_vm1, %v2273_v20 }
  0x3f   :  { %547 = vmatpush1.bf16.msra.mxu0 %v1832_v13 }
  0x40   :  { %548 = vmatprep.subr.bf16.mxu0 %v1839_v15  ;;  %1447 = vmatpush3.bf16.msra.mxu1 %v1863_v23 }
  0x41   :  { %1448 = vmatprep.subr.bf16.mxu1 %v2273_v20 }
  0x43   :  { %549 = vmatpush1.bf16.msra.mxu0 %v1842_v16 }
  0x44   :  { %550 = vmatprep.subr.bf16.mxu0 %v1846_v17  ;;  %1449 = vmatpush3.bf16.msra.mxu1 %v1876_v26 }
  0x45   :  { %1450 = vmatprep.subr.bf16.mxu1 %v2273_v20 }
  0x47   :  { %551 = vmatpush1.bf16.msra.mxu0 %v1855_v21 }
  0x48   :  { %552 = vmatprep.subr.bf16.mxu0 %v1858_v22  ;;  %1451 = vmatpush3.bf16.msra.mxu1 %v1890_v30 }
  0x49   :  { %1452 = vmatprep.subr.bf16.mxu1 %v2273_v20 }
  0x4b   :  { %553 = vmatpush1.bf16.msra.mxu0 %v1869_v24 }
  0x4c   :  { %554 = vmatprep.subr.bf16.mxu0 %v1873_v25  ;;  %1453 = vmatpush3.bf16.msra.mxu1 %v1902_v32 }
  0x4d   :  { %1454 = vmatprep.subr.bf16.mxu1 %v2273_v20 }
  0x4f   :  { %555 = vmatpush1.bf16.msra.mxu0 %v1883_v28 }
  0x50   :  { %556 = vmatprep.subr.bf16.mxu0 %v1887_v29  ;;  %1455 = vmatpush3.bf16.msra.mxu1 %v1907_v33 }
  0x51   :  { %1456 = vmatprep.subr.bf16.mxu1 %v2273_v20 }
  0x53   :  { %557 = vmatpush1.bf16.msra.mxu0 %v1897_v31 }
  0x54   :  { %646 = vmatprep.subr.bf16.mxu0 %v1810_v6  ;;  %1457 = vmatpush3.bf16.msra.mxu1 %v1915_v34 }
  0x55   :  { %1458 = vmatprep.subr.bf16.mxu1 %v2273_v20 }
  0x58   :  { %1459 = vmatpush3.bf16.msra.mxu1 %v1921_v35 }
  0x59   :  { %1464 = vmatprep.subr.bf16.mxu1 %v2273_v20 }
  0xd6   :  { %v167_v40 = vpop.f32.mrf.mxu0 }
  0xd8   :  { %v169_v42 = vpop.f32.mrf.mxu0 }
  0xd9   :  { %v170_v0 = vadd.f32 %v169_v42, %v60_v45 }
  0xda   :  { %v171_v44 = vpop.f32.mrf.mxu0 }
  0xdb   :  { %v1961_v46 = vadd.f32 %v171_v44, %v56_v43  ;;  %v1418_v57 = vpop.f32.mrf.mxu1 }
  0xdc   :  { %v173_v47 = vpop.f32.mrf.mxu0  ;;  %v1971_v59 = vadd.f32 %v1418_v57, %v64_v53 }
  0xdd   :  { %v1963_v49 = vadd.f32 %v173_v47, %v60_v45  ;;  %v240_v61 = vpop.f32.mrf.mxu1 }
  0xde   :  { %v177_v50 = vpop.f32.mrf.mxu0 }
  0xdf   :  { %v1965_v51 = vadd.f32 %v177_v50, %v56_v43  ;;  %v1419_v1 = vpop.f32.mrf.mxu1 }
  0xe0   :  { %v179_v52 = vpop.f32.mrf.mxu0  ;;  %v1977_v3 = vadd.f32 %v1419_v1, %v64_v53 }
  0xe1   :  { %v1967_v54 = vadd.f32 %v179_v52, %v60_v45  ;;  %v243_v5 = vpop.f32.mrf.mxu1 }
  0xe2   :  { %v181_v55 = vpop.f32.mrf.mxu0  ;;  %v1981_v12 = vadd.f32 %v243_v5, %v64_v53 }
  0xe3   :  { %v1969_v56 = vadd.f32 %v181_v55, %v56_v43  ;;  %v1422_v19 = vpop.f32.mrf.mxu1 }
  0xe4   :  { %v183_v58 = vpop.f32.mrf.mxu0  ;;  %v1985_v36 = vadd.f32 %v1422_v19, %v64_v53 }
  0xe5   :  { %v1973_v60 = vadd.f32 %v183_v58, %v60_v45  ;;  %v256_v38 = vpop.f32.mrf.mxu1 }
  0xe6   :  { %v187_v62 = vpop.f32.mrf.mxu0  ;;  %2275 = vst [vmem:[#allocation5_spill] sm:$0xff] %v1985_v36  ;;  %v1989_v41 = vadd.f32 %v256_v38, %v64_v53 }
  0xe7   :  { %v1975_v63 = vadd.f32 %v187_v62, %v56_v43  ;;  %v1423_v47 = vpop.f32.mrf.mxu1 }
  0xe8   :  { %v189_v2 = vpop.f32.mrf.mxu0  ;;  %v1993_v50 = vadd.f32 %v1423_v47, %v64_v53 }
  0xe9   :  { %v1979_v4 = vadd.f32 %v189_v2, %v60_v45  ;;  %v259_v55 = vpop.f32.mrf.mxu1  ;;  %v168_v2 = vadd.f32 %v167_v40, %v56_v43 }
  0xea   :  { %v191_v11 = vpop.f32.mrf.mxu0  ;;  %2276 = vst [vmem:[#allocation6_spill] sm:$0xff] %v1993_v50  ;;  %v1997_v58 = vadd.f32 %v259_v55, %v64_v53 }
  0xeb   :  { %v1983_v14 = vadd.f32 %v191_v11, %v56_v43 }
  0xec   :  { %v193_v27 = vpop.f32.mrf.mxu0 }
  0xed   :  { %v1987_v37 = vadd.f32 %v193_v27, %v60_v45 }
  0xee   :  { %v197_v39 = vpop.f32.mrf.mxu0 }
  0xef   :  { %v1991_v44 = vadd.f32 %v197_v39, %v56_v43 }
  0xf0   :  { %v199_v48 = vpop.f32.mrf.mxu0 }
  0xf1   :  { %v1995_v52 = vadd.f32 %v199_v48, %v60_v45 }
  0xf2   :  { %v201_v57 = vpop.f32.mrf.mxu0 }
  0xf3   :  { %2277 = vst [vmem:[#allocation7_spill] sm:$0xff] %v1995_v52  ;;  %v1999_v62 = vadd.f32 %v201_v57, %v56_v43  ;;  %v2006_v43 = vld [vmem:[%s2269_s4] ss:$0 sm:$0xff] }
  0xf4   :  { %v203_v1 = vpop.f32.mrf.mxu0 }
  0xf5   :  { %2278 = vst [vmem:[#allocation8_spill] sm:$0xff] %v1999_v62  ;;  %v2001_v5 = vadd.f32 %v203_v1, %v60_v45 }
  0xf6   :  { %v466_v11 = vpop.f32.mrf.mxu0 }
  0xf7   :  { %v513_v19 = vadd.f32 %v466_v11, %v168_v2 }
  0xf8   :  { %v468_v27 = vpop.f32.mrf.mxu0 }
  0xf9   :  { %v1317_v38 = vmul.f32 -1.442695, %v513_v19  ;;  %v514_v48 = vadd.f32 %v468_v27, %v170_v0  ;;  %v241_v0 = vadd.f32 %v240_v61, %v64_v53  ;;  %v2279_v53 = vmov 0.0  }
  0xfa   :  { %v470_v39 = vpop.f32.mrf.mxu0  ;;  %v2280_v61 = vmov 0  }
  0xfb   :  { %1634 = vpow2.f32 %v1317_v38  ;;  %v1318_v20 = vmul.f32 -1.442695, %v514_v48  ;;  %v507_v50 = vpop.f32.mrf.mxu1 }
  0xfc   :  { %v471_v47 = vpop.f32.mrf.mxu0  ;;  %v533_v42 = vadd.f32 %v2006_v43, %v507_v50 }
  0xfd   :  { %1636 = vpow2.f32 %v1318_v20  ;;  %v1442_v55 = vpop.f32.mrf.mxu1 }
  0xff   :  { %v510_v36 = vpop.f32.mrf.mxu1 }
 0x101   :  { %v1443_v52 = vpop.f32.mrf.mxu1 }
 0x108   :  { %v1635_v57 = vpop.eup %1634 }
 0x109   :  { %v521_v62 = vadd.f32 1.0, %v1635_v57 }
 0x10a   :  { %v1637_v40 = vpop.eup %1636 }
 0x10b   :  { %1638 = vrcp.f32 %v521_v62  ;;  %v522_v1 = vadd.f32 1.0, %v1637_v40 }
 0x10d   :  { %1640 = vrcp.f32 %v522_v1 }
 0x118   :  { %v1639_v45 = vpop.eup %1638 }
 0x119   :  { %v534_v2 = vmul.f32 %v1639_v45, %v533_v42 }
 0x11a   :  { %v1641_v36 = vpop.eup %1640 }
 0x11b   :  { %v535_v20 = vadd.f32 %v534_v2, %v241_v0  ;;  %v537_v11 = vsub.f32 1.0, %v1641_v36  ;;  %v539_v62 = vmul.f32 0.0, %v1641_v36 }
 0x11d   :  { %1642 = vtanh.f32 %v535_v20 }
 0x12a   :  { %v1643_v19 = vpop.eup %1642 }
 0x12b   :  { %v538_v52 = vmul.f32 %v1643_v19, %v537_v11 }
 0x12d   :  { %v2009_v27 = vadd.f32 %v539_v62, %v538_v52 }
 0x12f   :  { %v541_v38 = vpack.c.bf16 %v2009_v27, %v2009_v27 }
 0x131   :  { %575 = vmatmul.mubr.bf16.vlgmr.msra.gmra.mxu0 %v541_v38  ;;  %1461 = vmatmul.mubr.bf16.vlgmr.msra.gmra.mxu1 %v541_v38 }
 0x132   :  { %647 = vmatpush1.bf16.msra.mxu0 %v1813_v7  ;;  %1465 = vmatpush3.bf16.msra.mxu1 %v1849_v18 }
 0x133   :  { %648 = vmatprep.subr.bf16.mxu0 %v1816_v8  ;;  %1466 = vmatprep.subr.bf16.mxu1 %v2279_v53 }
 0x134   :  { %678 = vmatprep.mubr.bf16.mxu0 %v2280_v61  ;;  %1480 = vmatprep.mubr.msk.bf16.mxu1 %vm1760_vm1, %v2279_v53 }
 0x136   :  { %649 = vmatpush1.bf16.msra.mxu0 %v1820_v9  ;;  %1467 = vmatpush3.bf16.msra.mxu1 %v1863_v23 }
 0x137   :  { %650 = vmatprep.subr.bf16.mxu0 %v1824_v10  ;;  %1468 = vmatprep.subr.bf16.mxu1 %v2279_v53 }
 0x13a   :  { %651 = vmatpush1.bf16.msra.mxu0 %v1832_v13  ;;  %1469 = vmatpush3.bf16.msra.mxu1 %v1876_v26 }
 0x13b   :  { %652 = vmatprep.subr.bf16.mxu0 %v1839_v15  ;;  %1470 = vmatprep.subr.bf16.mxu1 %v2279_v53 }
 0x13e   :  { %653 = vmatpush1.bf16.msra.mxu0 %v1842_v16  ;;  %1471 = vmatpush3.bf16.msra.mxu1 %v1890_v30 }
 0x13f   :  { %654 = vmatprep.subr.bf16.mxu0 %v1846_v17  ;;  %1472 = vmatprep.subr.bf16.mxu1 %v2279_v53 }
 0x142   :  { %655 = vmatpush1.bf16.msra.mxu0 %v1855_v21  ;;  %1473 = vmatpush3.bf16.msra.mxu1 %v1902_v32 }
 0x143   :  { %656 = vmatprep.subr.bf16.mxu0 %v1858_v22  ;;  %1474 = vmatprep.subr.bf16.mxu1 %v2279_v53 }
 0x146   :  { %657 = vmatpush1.bf16.msra.mxu0 %v1869_v24  ;;  %1475 = vmatpush3.bf16.msra.mxu1 %v1907_v33 }
 0x147   :  { %658 = vmatprep.subr.bf16.mxu0 %v1873_v25  ;;  %1476 = vmatprep.subr.bf16.mxu1 %v2279_v53 }
 0x14a   :  { %659 = vmatpush1.bf16.msra.mxu0 %v1883_v28  ;;  %1477 = vmatpush3.bf16.msra.mxu1 %v1915_v34 }
 0x14b   :  { %660 = vmatprep.subr.bf16.mxu0 %v1887_v29  ;;  %1478 = vmatprep.subr.bf16.mxu1 %v2279_v53 }
 0x14e   :  { %661 = vmatpush1.bf16.msra.mxu0 %v1897_v31  ;;  %1479 = vmatpush3.bf16.msra.mxu1 %v1921_v35 }
 0x14f   :  { %750 = vmatprep.subr.bf16.mxu0 %v1810_v6  ;;  %1484 = vmatprep.subr.bf16.mxu1 %v2279_v53 }
 0x1f1   :  { %v576_v50 = vpop.f32.mrf.mxu0  ;;  %v617_v39 = vpop.f32.mrf.mxu1 }
 0x1f2   :  { %v623_v47 = vadd.f32 %v576_v50, %v1961_v46  ;;  %v637_v52 = vadd.f32 %v2006_v43, %v617_v39 }
 0x1f3   :  { %v578_v48 = vpop.f32.mrf.mxu0  ;;  %v1462_v55 = vpop.f32.mrf.mxu1 }
 0x1f4   :  { %v1320_v57 = vmul.f32 -1.442695, %v623_v47  ;;  %v624_v0 = vadd.f32 %v578_v48, %v1963_v49 }
 0x1f5   :  { %v580_v40 = vpop.f32.mrf.mxu0  ;;  %v620_v1 = vpop.f32.mrf.mxu1 }
 0x1f6   :  { %1644 = vpow2.f32 %v1320_v57  ;;  %v1321_v2 = vmul.f32 -1.442695, %v624_v0 }
 0x1f7   :  { %v581_v42 = vpop.f32.mrf.mxu0  ;;  %v1463_v45 = vpop.f32.mrf.mxu1 }
 0x1f8   :  { %1646 = vpow2.f32 %v1321_v2 }
 0x203   :  { %v1645_v20 = vpop.eup %1644 }
 0x204   :  { %v631_v36 = vadd.f32 1.0, %v1645_v20 }
 0x205   :  { %v1647_v11 = vpop.eup %1646 }
 0x206   :  { %1648 = vrcp.f32 %v631_v36  ;;  %v632_v19 = vadd.f32 1.0, %v1647_v11 }
 0x208   :  { %1650 = vrcp.f32 %v632_v19 }
 0x213   :  { %v1649_v46 = vpop.eup %1648 }
 0x214   :  { %v638_v62 = vmul.f32 %v1649_v46, %v637_v52 }
 0x215   :  { %v1651_v50 = vpop.eup %1650 }
 0x216   :  { %v639_v38 = vadd.f32 %v638_v62, %v1981_v12  ;;  %v641_v47 = vsub.f32 1.0, %v1651_v50  ;;  %v643_v49 = vmul.f32 %v1651_v50, %v2009_v27 }
 0x218   :  { %1652 = vtanh.f32 %v639_v38 }
 0x225   :  { %v1653_v55 = vpop.eup %1652 }
 0x226   :  { %v642_v57 = vmul.f32 %v1653_v55, %v641_v47 }
 0x228   :  { %v2053_v48 = vadd.f32 %v643_v49, %v642_v57 }
 0x22a   :  { %v645_v40 = vpack.c.bf16 %v2053_v48, %v2053_v48 }
 0x22c   :  { %679 = vmatmul.mubr.bf16.vlgmr.msra.gmra.mxu0 %v645_v40  ;;  %1481 = vmatmul.mubr.bf16.vlgmr.msra.gmra.mxu1 %v645_v40 }
 0x22d   :  { %751 = vmatpush1.bf16.msra.mxu0 %v1813_v7  ;;  %1485 = vmatpush3.bf16.msra.mxu1 %v1849_v18 }
 0x22e   :  { %752 = vmatprep.subr.bf16.mxu0 %v1816_v8  ;;  %1486 = vmatprep.subr.bf16.mxu1 %v2279_v53 }
 0x22f   :  { %782 = vmatprep.mubr.bf16.mxu0 %v2280_v61  ;;  %1500 = vmatprep.mubr.msk.bf16.mxu1 %vm1760_vm1, %v2279_v53 }
 0x231   :  { %753 = vmatpush1.bf16.msra.mxu0 %v1820_v9  ;;  %1487 = vmatpush3.bf16.msra.mxu1 %v1863_v23 }
 0x232   :  { %754 = vmatprep.subr.bf16.mxu0 %v1824_v10  ;;  %1488 = vmatprep.subr.bf16.mxu1 %v2279_v53 }
 0x235   :  { %755 = vmatpush1.bf16.msra.mxu0 %v1832_v13  ;;  %1489 = vmatpush3.bf16.msra.mxu1 %v1876_v26 }
 0x236   :  { %756 = vmatprep.subr.bf16.mxu0 %v1839_v15  ;;  %1490 = vmatprep.subr.bf16.mxu1 %v2279_v53 }
 0x239   :  { %757 = vmatpush1.bf16.msra.mxu0 %v1842_v16  ;;  %1491 = vmatpush3.bf16.msra.mxu1 %v1890_v30 }
 0x23a   :  { %758 = vmatprep.subr.bf16.mxu0 %v1846_v17  ;;  %1492 = vmatprep.subr.bf16.mxu1 %v2279_v53 }
 0x23d   :  { %759 = vmatpush1.bf16.msra.mxu0 %v1855_v21  ;;  %1493 = vmatpush3.bf16.msra.mxu1 %v1902_v32 }
 0x23e   :  { %760 = vmatprep.subr.bf16.mxu0 %v1858_v22  ;;  %1494 = vmatprep.subr.bf16.mxu1 %v2279_v53 }
 0x241   :  { %761 = vmatpush1.bf16.msra.mxu0 %v1869_v24  ;;  %1495 = vmatpush3.bf16.msra.mxu1 %v1907_v33 }
 0x242   :  { %762 = vmatprep.subr.bf16.mxu0 %v1873_v25  ;;  %1496 = vmatprep.subr.bf16.mxu1 %v2279_v53 }
 0x245   :  { %763 = vmatpush1.bf16.msra.mxu0 %v1883_v28  ;;  %1497 = vmatpush3.bf16.msra.mxu1 %v1915_v34 }
 0x246   :  { %764 = vmatprep.subr.bf16.mxu0 %v1887_v29  ;;  %1498 = vmatprep.subr.bf16.mxu1 %v2279_v53 }
 0x249   :  { %765 = vmatpush1.bf16.msra.mxu0 %v1897_v31  ;;  %1499 = vmatpush3.bf16.msra.mxu1 %v1921_v35 }
 0x24a   :  { %854 = vmatprep.subr.bf16.mxu0 %v1810_v6  ;;  %1504 = vmatprep.subr.bf16.mxu1 %v2279_v53 }
 0x2ec   :  { %v680_v12 = vpop.f32.mrf.mxu0  ;;  %v721_v27 = vpop.f32.mrf.mxu1 }
 0x2ed   :  { %v727_v39 = vadd.f32 %v680_v12, %v1965_v51  ;;  %v741_v50 = vadd.f32 %v2006_v43, %v721_v27 }
 0x2ee   :  { %v682_v1 = vpop.f32.mrf.mxu0  ;;  %v1482_v42 = vpop.f32.mrf.mxu1 }
 0x2ef   :  { %v1322_v45 = vmul.f32 -1.442695, %v727_v39  ;;  %v728_v11 = vadd.f32 %v682_v1, %v1967_v54 }
 0x2f0   :  { %v684_v0 = vpop.f32.mrf.mxu0  ;;  %v724_v2 = vpop.f32.mrf.mxu1 }
 0x2f1   :  { %1654 = vpow2.f32 %v1322_v45  ;;  %v1323_v19 = vmul.f32 -1.442695, %v728_v11 }
 0x2f2   :  { %v685_v20 = vpop.f32.mrf.mxu0  ;;  %v1483_v36 = vpop.f32.mrf.mxu1 }
 0x2f3   :  { %1656 = vpow2.f32 %v1323_v19 }
 0x2fe   :  { %v1655_v52 = vpop.eup %1654 }
 0x2ff   :  { %v735_v46 = vadd.f32 1.0, %v1655_v52 }
 0x300   :  { %v1657_v62 = vpop.eup %1656 }
 0x301   :  { %1658 = vrcp.f32 %v735_v46  ;;  %v736_v38 = vadd.f32 1.0, %v1657_v62 }
 0x303   :  { %1660 = vrcp.f32 %v736_v38 }
 0x30e   :  { %v1659_v51 = vpop.eup %1658 }
 0x30f   :  { %v742_v47 = vmul.f32 %v1659_v51, %v741_v50 }
 0x310   :  { %v1661_v57 = vpop.eup %1660 }
 0x311   :  { %v743_v55 = vadd.f32 %v742_v47, %v1971_v59  ;;  %v745_v49 = vsub.f32 1.0, %v1661_v57  ;;  %v747_v54 = vmul.f32 %v1661_v57, %v2053_v48 }
 0x313   :  { %1662 = vtanh.f32 %v743_v55 }
 0x320   :  { %v1663_v40 = vpop.eup %1662 }
 0x321   :  { %v746_v12 = vmul.f32 %v1663_v40, %v745_v49 }
 0x323   :  { %v2097_v39 = vadd.f32 %v747_v54, %v746_v12 }
 0x325   :  { %v749_v1 = vpack.c.bf16 %v2097_v39, %v2097_v39 }
 0x327   :  { %783 = vmatmul.mubr.bf16.vlgmr.msra.gmra.mxu0 %v749_v1  ;;  %1501 = vmatmul.mubr.bf16.vlgmr.msra.gmra.mxu1 %v749_v1 }
 0x328   :  { %855 = vmatpush1.bf16.msra.mxu0 %v1813_v7  ;;  %1505 = vmatpush3.bf16.msra.mxu1 %v1849_v18 }
 0x329   :  { %856 = vmatprep.subr.bf16.mxu0 %v1816_v8  ;;  %1506 = vmatprep.subr.bf16.mxu1 %v2279_v53 }
 0x32a   :  { %886 = vmatprep.mubr.bf16.mxu0 %v2280_v61  ;;  %1520 = vmatprep.mubr.msk.bf16.mxu1 %vm1760_vm1, %v2279_v53 }
 0x32c   :  { %857 = vmatpush1.bf16.msra.mxu0 %v1820_v9  ;;  %1507 = vmatpush3.bf16.msra.mxu1 %v1863_v23 }
 0x32d   :  { %858 = vmatprep.subr.bf16.mxu0 %v1824_v10  ;;  %1508 = vmatprep.subr.bf16.mxu1 %v2279_v53 }
 0x330   :  { %859 = vmatpush1.bf16.msra.mxu0 %v1832_v13  ;;  %1509 = vmatpush3.bf16.msra.mxu1 %v1876_v26 }
 0x331   :  { %860 = vmatprep.subr.bf16.mxu0 %v1839_v15  ;;  %1510 = vmatprep.subr.bf16.mxu1 %v2279_v53 }
 0x334   :  { %861 = vmatpush1.bf16.msra.mxu0 %v1842_v16  ;;  %1511 = vmatpush3.bf16.msra.mxu1 %v1890_v30 }
 0x335   :  { %862 = vmatprep.subr.bf16.mxu0 %v1846_v17  ;;  %1512 = vmatprep.subr.bf16.mxu1 %v2279_v53 }
 0x338   :  { %863 = vmatpush1.bf16.msra.mxu0 %v1855_v21  ;;  %1513 = vmatpush3.bf16.msra.mxu1 %v1902_v32 }
 0x339   :  { %864 = vmatprep.subr.bf16.mxu0 %v1858_v22  ;;  %1514 = vmatprep.subr.bf16.mxu1 %v2279_v53 }
 0x33c   :  { %865 = vmatpush1.bf16.msra.mxu0 %v1869_v24  ;;  %1515 = vmatpush3.bf16.msra.mxu1 %v1907_v33 }
 0x33d   :  { %866 = vmatprep.subr.bf16.mxu0 %v1873_v25  ;;  %1516 = vmatprep.subr.bf16.mxu1 %v2279_v53 }
 0x340   :  { %867 = vmatpush1.bf16.msra.mxu0 %v1883_v28  ;;  %1517 = vmatpush3.bf16.msra.mxu1 %v1915_v34 }
 0x341   :  { %868 = vmatprep.subr.bf16.mxu0 %v1887_v29  ;;  %1518 = vmatprep.subr.bf16.mxu1 %v2279_v53 }
 0x344   :  { %869 = vmatpush1.bf16.msra.mxu0 %v1897_v31  ;;  %1519 = vmatpush3.bf16.msra.mxu1 %v1921_v35 }
 0x345   :  { %958 = vmatprep.subr.bf16.mxu0 %v1810_v6  ;;  %1524 = vmatprep.subr.bf16.mxu1 %v2279_v53 }
 0x3e7   :  { %v784_v59 = vpop.f32.mrf.mxu0  ;;  %v825_v48 = vpop.f32.mrf.mxu1 }
 0x3e8   :  { %v831_v27 = vadd.f32 %v784_v59, %v1969_v56  ;;  %v845_v51 = vadd.f32 %v2006_v43, %v825_v48 }
 0x3e9   :  { %v786_v42 = vpop.f32.mrf.mxu0  ;;  %v1502_v45 = vpop.f32.mrf.mxu1 }
 0x3ea   :  { %v1324_v0 = vmul.f32 -1.442695, %v831_v27  ;;  %v832_v19 = vadd.f32 %v786_v42, %v1973_v60 }
 0x3eb   :  { %v788_v2 = vpop.f32.mrf.mxu0  ;;  %v828_v20 = vpop.f32.mrf.mxu1 }
 0x3ec   :  { %1664 = vpow2.f32 %v1324_v0  ;;  %v1325_v52 = vmul.f32 -1.442695, %v832_v19 }
 0x3ed   :  { %v789_v36 = vpop.f32.mrf.mxu0  ;;  %v1503_v11 = vpop.f32.mrf.mxu1 }
 0x3ee   :  { %1666 = vpow2.f32 %v1325_v52 }
 0x3f9   :  { %v1665_v46 = vpop.eup %1664 }
 0x3fa   :  { %v839_v62 = vadd.f32 1.0, %v1665_v46 }
 0x3fb   :  { %v1667_v38 = vpop.eup %1666 }
 0x3fc   :  { %1668 = vrcp.f32 %v839_v62  ;;  %v840_v50 = vadd.f32 1.0, %v1667_v38 }
 0x3fe   :  { %1670 = vrcp.f32 %v840_v50 }
 0x409   :  { %v1669_v56 = vpop.eup %1668 }
 0x40a   :  { %v846_v47 = vmul.f32 %v1669_v56, %v845_v51 }
 0x40b   :  { %v1671_v57 = vpop.eup %1670 }
 0x40c   :  { %v847_v55 = vadd.f32 %v846_v47, %v1977_v3  ;;  %v849_v49 = vsub.f32 1.0, %v1671_v57  ;;  %v851_v60 = vmul.f32 %v1671_v57, %v2097_v39  ;;  %v2189_v57 = vld [vmem:[#allocation2 + $0xa8] ss:$12 sps:$4 sm:$0xff]  }
 0x40e   :  { %1672 = vtanh.f32 %v847_v55 }
 0x41b   :  { %v1673_v40 = vpop.eup %1672 }
 0x41c   :  { %v850_v12 = vmul.f32 %v1673_v40, %v849_v49 }
 0x41e   :  { %v2141_v54 = vadd.f32 %v851_v60, %v850_v12 }
 0x420   :  { %v853_v1 = vpack.c.bf16 %v2141_v54, %v2141_v54 }
 0x422   :  { %887 = vmatmul.mubr.bf16.vlgmr.msra.gmra.mxu0 %v853_v1  ;;  %1521 = vmatmul.mubr.bf16.vlgmr.msra.gmra.mxu1 %v853_v1 }
 0x423   :  { %959 = vmatpush1.bf16.msra.mxu0 %v1813_v7  ;;  %1525 = vmatpush3.bf16.msra.mxu1 %v1849_v18 }
 0x424   :  { %960 = vmatprep.subr.bf16.mxu0 %v1816_v8  ;;  %1526 = vmatprep.subr.bf16.mxu1 %v2279_v53 }
 0x425   :  { %990 = vmatprep.mubr.bf16.mxu0 %v2280_v61  ;;  %1540 = vmatprep.mubr.msk.bf16.mxu1 %vm1760_vm1, %v2279_v53 }
 0x427   :  { %961 = vmatpush1.bf16.msra.mxu0 %v1820_v9  ;;  %1527 = vmatpush3.bf16.msra.mxu1 %v1863_v23 }
 0x428   :  { %962 = vmatprep.subr.bf16.mxu0 %v1824_v10  ;;  %1528 = vmatprep.subr.bf16.mxu1 %v2279_v53 }
 0x42b   :  { %963 = vmatpush1.bf16.msra.mxu0 %v1832_v13  ;;  %1529 = vmatpush3.bf16.msra.mxu1 %v1876_v26 }
 0x42c   :  { %964 = vmatprep.subr.bf16.mxu0 %v1839_v15  ;;  %1530 = vmatprep.subr.bf16.mxu1 %v2279_v53 }
 0x42f   :  { %965 = vmatpush1.bf16.msra.mxu0 %v1842_v16  ;;  %1531 = vmatpush3.bf16.msra.mxu1 %v1890_v30 }
 0x430   :  { %966 = vmatprep.subr.bf16.mxu0 %v1846_v17  ;;  %1532 = vmatprep.subr.bf16.mxu1 %v2279_v53 }
 0x433   :  { %967 = vmatpush1.bf16.msra.mxu0 %v1855_v21  ;;  %1533 = vmatpush3.bf16.msra.mxu1 %v1902_v32 }
 0x434   :  { %968 = vmatprep.subr.bf16.mxu0 %v1858_v22  ;;  %1534 = vmatprep.subr.bf16.mxu1 %v2279_v53 }
 0x437   :  { %969 = vmatpush1.bf16.msra.mxu0 %v1869_v24  ;;  %1535 = vmatpush3.bf16.msra.mxu1 %v1907_v33 }
 0x438   :  { %970 = vmatprep.subr.bf16.mxu0 %v1873_v25  ;;  %1536 = vmatprep.subr.bf16.mxu1 %v2279_v53 }
 0x43b   :  { %971 = vmatpush1.bf16.msra.mxu0 %v1883_v28  ;;  %1537 = vmatpush3.bf16.msra.mxu1 %v1915_v34 }
 0x43c   :  { %972 = vmatprep.subr.bf16.mxu0 %v1887_v29  ;;  %1538 = vmatprep.subr.bf16.mxu1 %v2279_v53 }
 0x43f   :  { %973 = vmatpush1.bf16.msra.mxu0 %v1897_v31  ;;  %1539 = vmatpush3.bf16.msra.mxu1 %v1921_v35 }
 0x440   :  { %1062 = vmatprep.subr.bf16.mxu0 %v1810_v6  ;;  %1544 = vmatprep.subr.bf16.mxu1 %v2279_v53 }
 0x4e2   :  { %v888_v7 = vpop.f32.mrf.mxu0  ;;  %v929_v8 = vpop.f32.mrf.mxu1 }
 0x4e3   :  { %v935_v3 = vadd.f32 %v888_v7, %v1975_v63  ;;  %v949_v52 = vadd.f32 %v2006_v43, %v929_v8 }
 0x4e4   :  { %v890_v39 = vpop.f32.mrf.mxu0  ;;  %v1522_v59 = vpop.f32.mrf.mxu1 }
 0x4e5   :  { %v1326_v48 = vmul.f32 -1.442695, %v935_v3  ;;  %v936_v2 = vadd.f32 %v890_v39, %v1979_v4  ;;  %v1717_v59 = vld [vmem:[#allocation2 + $0xb0] ss:$12 sps:$4 sm:$0xff]  }
 0x4e6   :  { %v892_v27 = vpop.f32.mrf.mxu0  ;;  %v932_v42 = vpop.f32.mrf.mxu1 }
 0x4e7   :  { %1674 = vpow2.f32 %v1326_v48  ;;  %v1327_v20 = vmul.f32 -1.442695, %v936_v2  ;;  %v1719_v48 = vld [vmem:[#allocation2 + $0x98] ss:$12 sps:$4 sm:$0xff]   ;;  %v1720_v27 = vld [vmem:[#allocation2 + $0x7c] ss:$12 sps:$4 sm:$0xff]  }
 0x4e8   :  { %v893_v45 = vpop.f32.mrf.mxu0  ;;  %v1523_v0 = vpop.f32.mrf.mxu1  ;;  %v1721_v42 = vld [vmem:[#allocation2 + $0x78] ss:$12 sps:$4 sm:$0xff]  }
 0x4e9   :  { %1676 = vpow2.f32 %v1327_v20  ;;  %v1722_v45 = vld [vmem:[#allocation2 + $0x80] ss:$12 sps:$4 sm:$0xff]   ;;  %v1723_v0 = vld [vmem:[#allocation2 + $0x64] ss:$12 sps:$4 sm:$0xff]   ;;  %v1726_v20 = vld [vmem:[#allocation2 + $0x48] ss:$12 sps:$4 sm:$0xff]  }
 0x4ea   :  { %v1725_v2 = vld [vmem:[#allocation2 + $0x4c] ss:$12 sps:$4 sm:$0xff]  }
 0x4f4   :  { %v1675_v36 = vpop.eup %1674 }
 0x4f5   :  { %v943_v6 = vadd.f32 1.0, %v1675_v36  ;;  %v1727_v36 = vld [vmem:[#allocation2 + $0x34] ss:$12 sps:$4 sm:$0xff]  }
 0x4f6   :  { %v1677_v11 = vpop.eup %1676 }
 0x4f7   :  { %1678 = vrcp.f32 %v943_v6  ;;  %v944_v19 = vadd.f32 1.0, %v1677_v11  ;;  %v1728_v6 = vld [vmem:[#allocation2 + $0x30] ss:$12 sps:$4 sm:$0xff]  }
 0x4f8   :  { %v1729_v11 = vld [vmem:[#allocation2 + $0x1c] ss:$12 sps:$4 sm:$0xff]  }
 0x4f9   :  { %1680 = vrcp.f32 %v944_v19  ;;  %v1731_v19 = vld [vmem:[#allocation2 + $0x4] ss:$12 sps:$4 sm:$0xff]  }
 0x504   :  { %v1679_v63 = vpop.eup %1678 }
 0x505   :  { %v950_v46 = vmul.f32 %v1679_v63, %v949_v52 }
 0x506   :  { %v1681_v38 = vpop.eup %1680 }
 0x507   :  { %v951_v62 = vadd.f32 %v950_v46, %v1989_v41  ;;  %v953_v50 = vsub.f32 1.0, %v1681_v38  ;;  %v955_v4 = vmul.f32 %v1681_v38, %v2141_v54  ;;  %v2193_v41 = vld [vmem:[#allocation2 + $0x94] ss:$12 sps:$4 sm:$0xff]  }
 0x509   :  { %1682 = vtanh.f32 %v951_v62 }
 0x516   :  { %v1683_v51 = vpop.eup %1682 }
 0x517   :  { %v954_v56 = vmul.f32 %v1683_v51, %v953_v50 }
 0x519   :  { %v2185_v47 = vadd.f32 %v955_v4, %v954_v56  ;;  %v2281_v4 = vld [vmem:[#allocation7_spill] sm:$0xff] }
 0x51b   :  { %v957_v55 = vpack.c.bf16 %v2185_v47, %v2185_v47 }
 0x51d   :  { %991 = vmatmul.mubr.bf16.vlgmr.msra.gmra.mxu0 %v957_v55  ;;  %1541 = vmatmul.mubr.bf16.vlgmr.msra.gmra.mxu1 %v957_v55 }
 0x51e   :  { %1063 = vmatpush1.bf16.msra.mxu0 %v2189_v57  ;;  %1545 = vmatpush3.bf16.msra.mxu1 %v1849_v18 }
 0x51f   :  { %1064 = vmatprep.subr.bf16.mxu0 %v2193_v41  ;;  %1546 = vmatprep.subr.bf16.mxu1 %v2279_v53 }
 0x520   :  { %1094 = vmatprep.mubr.bf16.mxu0 %v2280_v61  ;;  %1560 = vmatprep.mubr.msk.bf16.mxu1 %vm1760_vm1, %v2279_v53 }
 0x522   :  { %1065 = vmatpush1.bf16.msra.mxu0 %v1820_v9  ;;  %1547 = vmatpush3.bf16.msra.mxu1 %v1863_v23  ;;  %v1716_v9 = vld [vmem:[#allocation2 + $0xac] ss:$12 sps:$4 sm:$0xff]  }
 0x523   :  { %1066 = vmatprep.subr.bf16.mxu0 %v1824_v10  ;;  %1548 = vmatprep.subr.bf16.mxu1 %v2279_v53 }
 0x526   :  { %1067 = vmatpush1.bf16.msra.mxu0 %v1832_v13  ;;  %1549 = vmatpush3.bf16.msra.mxu1 %v1876_v26 }
 0x527   :  { %1068 = vmatprep.subr.bf16.mxu0 %v1839_v15  ;;  %1550 = vmatprep.subr.bf16.mxu1 %v2279_v53 }
 0x52a   :  { %1069 = vmatpush1.bf16.msra.mxu0 %v1842_v16  ;;  %1551 = vmatpush3.bf16.msra.mxu1 %v1890_v30 }
 0x52b   :  { %1070 = vmatprep.subr.bf16.mxu0 %v1846_v17  ;;  %1552 = vmatprep.subr.bf16.mxu1 %v2279_v53 }
 0x52e   :  { %1071 = vmatpush1.bf16.msra.mxu0 %v1855_v21  ;;  %1553 = vmatpush3.bf16.msra.mxu1 %v1902_v32 }
 0x52f   :  { %1072 = vmatprep.subr.bf16.mxu0 %v1858_v22  ;;  %1554 = vmatprep.subr.bf16.mxu1 %v2279_v53 }
 0x532   :  { %1073 = vmatpush1.bf16.msra.mxu0 %v1869_v24  ;;  %1555 = vmatpush3.bf16.msra.mxu1 %v1907_v33 }
 0x533   :  { %1074 = vmatprep.subr.bf16.mxu0 %v1873_v25  ;;  %1556 = vmatprep.subr.bf16.mxu1 %v2279_v53 }
 0x536   :  { %1075 = vmatpush1.bf16.msra.mxu0 %v1883_v28  ;;  %1557 = vmatpush3.bf16.msra.mxu1 %v1915_v34 }
 0x537   :  { %1076 = vmatprep.subr.bf16.mxu0 %v1887_v29  ;;  %1558 = vmatprep.subr.bf16.mxu1 %v2279_v53 }
 0x53a   :  { %1077 = vmatpush1.bf16.msra.mxu0 %v1897_v31  ;;  %1559 = vmatpush3.bf16.msra.mxu1 %v1921_v35 }
 0x53b   :  { %1166 = vmatprep.subr.bf16.mxu0 %v1716_v9  ;;  %1564 = vmatprep.subr.bf16.mxu1 %v2279_v53 }
 0x5dd   :  { %v992_v10 = vpop.f32.mrf.mxu0  ;;  %v1033_v13 = vpop.f32.mrf.mxu1 }
 0x5de   :  { %v1039_v15 = vadd.f32 %v992_v10, %v1983_v14  ;;  %v1053_v40 = vadd.f32 %v2006_v43, %v1033_v13  ;;  %v2282_v13 = vld [vmem:[#allocation5_spill] sm:$0xff] }
 0x5df   :  { %v994_v16 = vpop.f32.mrf.mxu0  ;;  %v1542_v17 = vpop.f32.mrf.mxu1 }
 0x5e0   :  { %v1328_v18 = vmul.f32 -1.442695, %v1039_v15  ;;  %v1040_v25 = vadd.f32 %v994_v16, %v1987_v37 }
 0x5e1   :  { %v996_v21 = vpop.f32.mrf.mxu0  ;;  %v1036_v22 = vpop.f32.mrf.mxu1 }
 0x5e2   :  { %1684 = vpow2.f32 %v1328_v18  ;;  %v1329_v26 = vmul.f32 -1.442695, %v1040_v25 }
 0x5e3   :  { %v997_v23 = vpop.f32.mrf.mxu0  ;;  %v1543_v24 = vpop.f32.mrf.mxu1 }
 0x5e4   :  { %1686 = vpow2.f32 %v1329_v26 }
 0x5ef   :  { %v1685_v28 = vpop.eup %1684 }
 0x5f0   :  { %v1047_v29 = vadd.f32 1.0, %v1685_v28  ;;  %v2283_v28 = vld [vmem:[#allocation8_spill] sm:$0xff] }
 0x5f1   :  { %v1687_v31 = vpop.eup %1686 }
 0x5f2   :  { %1688 = vrcp.f32 %v1047_v29  ;;  %v1048_v49 = vadd.f32 1.0, %v1687_v31 }
 0x5f4   :  { %1690 = vrcp.f32 %v1048_v49 }
 0x5ff   :  { %v1689_v14 = vpop.eup %1688 }
 0x600   :  { %v1054_v12 = vmul.f32 %v1689_v14, %v1053_v40 }
 0x601   :  { %v1691_v54 = vpop.eup %1690 }
 0x602   :  { %v1055_v60 = vadd.f32 %v1054_v12, %v1997_v58  ;;  %v1057_v1 = vsub.f32 1.0, %v1691_v54  ;;  %v1059_v37 = vmul.f32 %v1691_v54, %v2185_v47  ;;  %v1718_v58 = vld [vmem:[#allocation2 + $0x90] ss:$12 sps:$4 sm:$0xff]  }
 0x604   :  { %1692 = vtanh.f32 %v1055_v60 }
 0x611   :  { %v1693_v7 = vpop.eup %1692 }
 0x612   :  { %v1058_v8 = vmul.f32 %v1693_v7, %v1057_v1 }
 0x614   :  { %v2232_v3 = vadd.f32 %v1059_v37, %v1058_v8 }
 0x616   :  { %v1061_v39 = vpack.c.bf16 %v2232_v3, %v2232_v3 }
 0x618   :  { %1095 = vmatmul.mubr.bf16.vlgmr.msra.gmra.mxu0 %v1061_v39  ;;  %1561 = vmatmul.mubr.bf16.vlgmr.msra.gmra.mxu1 %v1061_v39 }
 0x619   :  { %1167 = vmatpush1.bf16.msra.mxu0 %v2189_v57  ;;  %1565 = vmatpush3.bf16.msra.mxu1 %v1717_v59 }
 0x61a   :  { %1168 = vmatprep.subr.bf16.mxu0 %v2193_v41  ;;  %1566 = vmatprep.subr.bf16.mxu1 %v2279_v53 }
 0x61b   :  { %1198 = vmatprep.mubr.bf16.mxu0 %v2280_v61  ;;  %1580 = vmatprep.mubr.msk.bf16.mxu1 %vm1760_vm1, %v2279_v53  ;;  %v1724_v61 = vld [vmem:[#allocation2 + $0x60] ss:$12 sps:$4 sm:$0xff]  }
 0x61d   :  { %1169 = vmatpush1.bf16.msra.mxu0 %v1718_v58  ;;  %1567 = vmatpush3.bf16.msra.mxu1 %v1719_v48 }
 0x61e   :  { %1170 = vmatprep.subr.bf16.mxu0 %v1720_v27  ;;  %1568 = vmatprep.subr.bf16.mxu1 %v2279_v53  ;;  %v2284_v27 = vld [vmem:[#allocation6_spill] sm:$0xff] }
 0x621   :  { %1171 = vmatpush1.bf16.msra.mxu0 %v1721_v42  ;;  %1569 = vmatpush3.bf16.msra.mxu1 %v1722_v45 }
 0x622   :  { %1172 = vmatprep.subr.bf16.mxu0 %v1723_v0  ;;  %1570 = vmatprep.subr.bf16.mxu1 %v2279_v53 }
 0x625   :  { %1173 = vmatpush1.bf16.msra.mxu0 %v1724_v61  ;;  %1571 = vmatpush3.bf16.msra.mxu1 %v1890_v30  ;;  %v1730_v30 = vld [vmem:[#allocation2 + $0x18] ss:$12 sps:$4 sm:$0xff]  }
 0x626   :  { %1174 = vmatprep.subr.bf16.mxu0 %v1725_v2  ;;  %1572 = vmatprep.subr.bf16.mxu1 %v2279_v53 }
 0x629   :  { %1175 = vmatpush1.bf16.msra.mxu0 %v1726_v20  ;;  %1573 = vmatpush3.bf16.msra.mxu1 %v1902_v32  ;;  %v1732_v32 = vld [vmem:[#allocation2] ss:$12 sps:$4 sm:$0xff]  }
 0x62a   :  { %1176 = vmatprep.subr.bf16.mxu0 %v1727_v36  ;;  %1574 = vmatprep.subr.bf16.mxu1 %v2279_v53 }
 0x62d   :  { %1177 = vmatpush1.bf16.msra.mxu0 %v1728_v6  ;;  %1575 = vmatpush3.bf16.msra.mxu1 %v1907_v33 }
 0x62e   :  { %1178 = vmatprep.subr.bf16.mxu0 %v1729_v11  ;;  %1576 = vmatprep.subr.bf16.mxu1 %v2279_v53 }
 0x631   :  { %1179 = vmatpush1.bf16.msra.mxu0 %v1730_v30  ;;  %1577 = vmatpush3.bf16.msra.mxu1 %v1915_v34 }
 0x632   :  { %1180 = vmatprep.subr.bf16.mxu0 %v1731_v19  ;;  %1578 = vmatprep.subr.bf16.mxu1 %v2279_v53 }
 0x635   :  { %1181 = vmatpush1.bf16.msra.mxu0 %v1732_v32  ;;  %1579 = vmatpush3.bf16.msra.mxu1 %v1921_v35 }
 0x6d8   :  { %v1096_v52 = vpop.f32.mrf.mxu0  ;;  %v1137_v63 = vpop.f32.mrf.mxu1 }
 0x6d9   :  { %v1143_v33 = vadd.f32 %v1096_v52, %v1991_v44  ;;  %v1157_v9 = vadd.f32 %v2006_v43, %v1137_v63 }
 0x6da   :  { %v1098_v46 = vpop.f32.mrf.mxu0  ;;  %v1562_v62 = vpop.f32.mrf.mxu1 }
 0x6db   :  { %v1330_v38 = vmul.f32 -1.442695, %v1143_v33  ;;  %v1144_v47 = vadd.f32 %v1098_v46, %v2281_v4 }
 0x6dc   :  { %v1100_v50 = vpop.f32.mrf.mxu0  ;;  %v1140_v51 = vpop.f32.mrf.mxu1 }
 0x6dd   :  { %1694 = vpow2.f32 %v1330_v38  ;;  %v1331_v55 = vmul.f32 -1.442695, %v1144_v47 }
 0x6de   :  { %v1101_v56 = vpop.f32.mrf.mxu0  ;;  %v1563_v34 = vpop.f32.mrf.mxu1 }
 0x6df   :  { %1696 = vpow2.f32 %v1331_v55 }
 0x6ea   :  { %v1695_v53 = vpop.eup %1694 }
 0x6eb   :  { %v1151_v57 = vadd.f32 1.0, %v1695_v53 }
 0x6ec   :  { %v1697_v35 = vpop.eup %1696 }
 0x6ed   :  { %1698 = vrcp.f32 %v1151_v57  ;;  %v1152_v41 = vadd.f32 1.0, %v1697_v35 }
 0x6ef   :  { %1700 = vrcp.f32 %v1152_v41 }
 0x6fa   :  { %v1699_v44 = vpop.eup %1698 }
 0x6fb   :  { %v1158_v10 = vmul.f32 %v1699_v44, %v1157_v9 }
 0x6fc   :  { %v1701_v16 = vpop.eup %1700 }
 0x6fd   :  { %v1159_v15 = vadd.f32 %v1158_v10, %v2282_v13  ;;  %v1161_v17 = vsub.f32 1.0, %v1701_v16  ;;  %v1163_v22 = vmul.f32 %v1701_v16, %v2232_v3 }
 0x6ff   :  { %1702 = vtanh.f32 %v1159_v15 }
 0x70c   :  { %v1703_v18 = vpop.eup %1702 }
 0x70d   :  { %v1162_v21 = vmul.f32 %v1703_v18, %v1161_v17 }
 0x70f   :  { %v1164_v23 = vadd.f32 %v1163_v22, %v1162_v21 }
 0x711   :  { %v1165_v24 = vpack.c.bf16 %v1164_v23, %v1164_v23 }
 0x713   :  { %1199 = vmatmul.mubr.bf16.vlgmr.msra.gmra.mxu0 %v1165_v24  ;;  %1581 = vmatmul.mubr.bf16.vlgmr.msra.gmra.mxu1 %v1165_v24 }
 0x7d3   :  { %v1200_v25 = vpop.f32.mrf.mxu0  ;;  %v1241_v26 = vpop.f32.mrf.mxu1 }
 0x7d4   :  { %v1247_v29 = vadd.f32 %v1200_v25, %v2283_v28  ;;  %v1261_v59 = vadd.f32 %v2006_v43, %v1241_v26 }
 0x7d5   :  { %v1202_v31 = vpop.f32.mrf.mxu0  ;;  %v1582_v49 = vpop.f32.mrf.mxu1 }
 0x7d6   :  { %v1332_v40 = vmul.f32 -1.442695, %v1247_v29  ;;  %v1248_v1 = vadd.f32 %v1202_v31, %v2001_v5 }
 0x7d7   :  { %v1204_v14 = vpop.f32.mrf.mxu0  ;;  %v1244_v12 = vpop.f32.mrf.mxu1 }
 0x7d8   :  { %1704 = vpow2.f32 %v1332_v40  ;;  %v1333_v7 = vmul.f32 -1.442695, %v1248_v1 }
 0x7d9   :  { %v1205_v60 = vpop.f32.mrf.mxu0  ;;  %v1583_v54 = vpop.f32.mrf.mxu1 }
 0x7da   :  { %1706 = vpow2.f32 %v1333_v7 }
 0x7e5   :  { %v1705_v8 = vpop.eup %1704 }
 0x7e6   :  { %v1255_v37 = vadd.f32 1.0, %v1705_v8 }
 0x7e7   :  { %v1707_v3 = vpop.eup %1706 }
 0x7e8   :  { %1708 = vrcp.f32 %v1255_v37  ;;  %v1256_v39 = vadd.f32 1.0, %v1707_v3 }
 0x7ea   :  { %1710 = vrcp.f32 %v1256_v39 }
 0x7f5   :  { %v1709_v58 = vpop.eup %1708 }
 0x7f6   :  { %v1262_v48 = vmul.f32 %v1709_v58, %v1261_v59 }
 0x7f7   :  { %v1711_v45 = vpop.eup %1710 }
 0x7f8   :  { %v1263_v42 = vadd.f32 %v1262_v48, %v2284_v27  ;;  %v1265_v0 = vsub.f32 1.0, %v1711_v45  ;;  %v1267_v5 = vmul.f32 %v1711_v45, %v1164_v23 }
 0x7fa   :  { %1712 = vtanh.f32 %v1263_v42 }
 0x807   :  { %v1713_v61 = vpop.eup %1712 }
 0x808   :  { %v1266_v2 = vmul.f32 %v1713_v61, %v1265_v0 }
 0x80a   :  { %v1268_v20 = vadd.f32 %v1267_v5, %v1266_v2 }
 0x80c   :  { %1269 = vst [vmem:[%s2270_s5] sm:$0xff] %v1268_v20 }
 0x80d   :  { %1274 = vsyncpa [#allocation3], 1 }

</bundles_post_ra>
